<compile_context>
chip_gen: v5e
topology: v5e:2x2
jax: 0.10.0
libtpu: 0.0.40
codegen_flags: <defaults>
</compile_context>

<pallas_src>
import functools

import jax
import jax.numpy as jnp
from jax.experimental import pallas as pl
from jax.experimental.pallas import tpu as pltpu


def _fold_to_tile(x):
    """(H, W) f32 -> (8, 128) partial sum using only tile-aligned VALU adds."""
    h, w = x.shape
    if h % 8 == 0 and w % 128 == 0:
        acc = x[0:8, :]
        for i in range(1, h // 8):                       # sublane-group fold
            acc = acc + x[8 * i:8 * (i + 1), :]
        out = acc[:, 0:128]
        for j in range(1, w // 128):                     # lane-group fold
            out = out + acc[:, 128 * j:128 * (j + 1)]
        return out
    # Fallback for odd shapes: full reduce, value placed at (0, 0), zeros else.
    row = jax.lax.broadcasted_iota(jnp.int32, (8, 128), 0)
    col = jax.lax.broadcasted_iota(jnp.int32, (8, 128), 1)
    return jnp.where((row == 0) & (col == 0), jnp.sum(x), 0.0)


def _mi_kernel(bce_scale, kl_scale, hidden, n_total, needs_mask,
               rgb_ref, point_ref, event_ref,
               eps_rgb_ref, eps_point_ref, eps_event_ref,
               w_ref, b_ref,
               z_rgb_ref, z_point_ref, z_event_ref, loss_ref):
    """Grid = (B, cdiv(N, TILE_N)).  One step = one (batch, N-tile) block."""
    H = hidden

    def l2norm(ref):
        x = ref[0]                                        # (C, TILE_N)
        inv = jax.lax.rsqrt(jnp.sum(x * x, axis=0, keepdims=True) + 1e-6)
        return x * inv

    # Fused mu|logvar heads for all 3 modalities: block-diagonal weight.
    x_stack = jnp.concatenate(
        [l2norm(rgb_ref), l2norm(point_ref), l2norm(event_ref)], axis=0)
    y = jnp.dot(w_ref[...], x_stack, preferred_element_type=jnp.float32)
    y = jnp.tanh(y + b_ref[...])                          # (6H, TILE_N)

    def latent(base, eps_ref, z_out_ref):
        mu = y[base:base + H, :]
        lv = y[base + H:base + 2 * H, :]
        std = jnp.exp(0.5 * lv)
        z = eps_ref[0] * std + mu                         # reparametrize
        z_out_ref[0] = z                                  # lane-dense store
        # Reference uses Normal(mu, scale=exp(logvar)) => var = exp(2*lv);
        # reuse std instead of another exp.
        sq = std * std
        var = sq * sq
        hiv = 0.5 * pl.reciprocal(var, approx=True)       # 1 / (2*var)
        # log-sigmoid identity: one exp + one log + one approx rcp per element.
        # NOTE: torch's BCE clamp at -100 is reproduced by the maximums below;
        # the only mismatch is log(sigmoid(z)) for z > ~88 (exp overflow),
        # unreachable with |mu| < 1 and std <= e^0.5.
        e = jnp.exp(z)
        s = e * pl.reciprocal(1.0 + e, approx=True)       # sigmoid(z)
        lse = jnp.log(1.0 + e)                            # softplus(z)
        lp = jnp.maximum(z - lse, -100.0)                 # log(sigmoid(z))
        l1 = jnp.maximum(-lse, -100.0)                    # log(1 - sigmoid(z))
        return mu, var, hiv, s, lp, l1

    H2 = 2 * H
    mu_r, var_r, hiv_r, s_r, lp_r, l1_r = latent(0, eps_rgb_ref, z_rgb_ref)
    mu_p, var_p, hiv_p, s_p, lp_p, l1_p = latent(H2, eps_point_ref, z_point_ref)
    mu_e, var_e, hiv_e, s_e, lp_e, l1_e = latent(2 * H2, eps_event_ref, z_event_ref)

    # --- 6 directed BCE terms regrouped around S = s_r + s_p + s_e ---------
    # sum_{a != b} BCE(a | target=b) = -sum_a [(S - s_a)*log(s_a)
    #                                          + (2 - (S - s_a))*log(1 - s_a)]
    S = s_r + s_p + s_e
    t_r = S - s_r
    t_p = S - s_p
    t_e = S - s_e
    bce_elem = -(t_r * lp_r + (2.0 - t_r) * l1_r
                 + t_p * lp_p + (2.0 - t_p) * l1_p
                 + t_e * lp_e + (2.0 - t_e) * l1_e)

    # --- 3 bidirectional KLs regrouped (logvar terms cancel pairwise) ------
    # sum_{a != b} (var_a + (mu_a - mu_b)^2) / (2*var_b) - 3
    #   = sum_b hiv_b * [(V - var_b) + Q + 3*mu_b^2 - 2*mu_b*M] - 3
    mu2_r = mu_r * mu_r
    mu2_p = mu_p * mu_p
    mu2_e = mu_e * mu_e
    V = var_r + var_p + var_e
    Q = mu2_r + mu2_p + mu2_e
    M2 = 2.0 * (mu_r + mu_p + mu_e)
    kl_elem = (hiv_r * ((V - var_r) + (Q + 3.0 * mu2_r - mu_r * M2))
               + hiv_p * ((V - var_p) + (Q + 3.0 * mu2_p - mu_p * M2))
               + hiv_e * ((V - var_e) + (Q + 3.0 * mu2_e - mu_e * M2))
               - 3.0)

    loss_elem = bce_elem * bce_scale - kl_elem * kl_scale

    if needs_mask:
        # Trailing padded tile: zero contributions from lanes >= N.
        tile_w = loss_elem.shape[1]
        valid = n_total - pl.program_id(1) * tile_w
        lane = jax.lax.broadcasted_iota(jnp.int32, loss_elem.shape, 1)
        loss_elem = jnp.where(lane < valid, loss_elem, 0.0)

    # Per-(b, n-tile) partial: no cross-step accumulation -> grid fully parallel.
    loss_ref[0, 0] = _fold_to_tile(loss_elem)


def _pick_tile_n(n, max_tile=256):
    """Largest lane-aligned tile <= max_tile; non-divisible N is tail-masked."""
    if n <= max_tile:
        return n
    for t in (256, 128):
        if n % t == 0:
            return t
    return max_tile        # trailing tile padded & masked in-kernel


def mutual_info_reg_3d_event(rgb_feat, point_feat, event_feat, weights, biases,
                             eps_rgb, eps_point, eps_event):
    """rgb/point/event_feat: (B, C, N) float32 (PyTorch NCW layout).
    weights: (3, 2H, C) per-modality [mu; logvar] head weights (rgb, point,
    event).  biases: (3, 2H, 1).  eps_*: (B, H, N) normal noise.
    Returns (latent_loss scalar, z_rgb, z_point, z_event), z_* in (B, H, N)."""
    B, C, N = rgb_feat.shape
    H2 = weights.shape[1]
    H = H2 // 2

    tile_n = _pick_tile_n(N)
    num_n = pl.cdiv(N, tile_n)
    needs_mask = (N % tile_n) != 0

    # latent_loss = sum(6 BCE means) - sum(3 bidirectional KL means), then /N.
    bce_scale = 1.0 / (B * H * N * N)    # BCE mean over B*H*N, then /N
    kl_scale = 1.0 / (B * H * N)         # KL mean over B*H, then /N

    # Host-side fused block-diagonal head: one (6H, 3C) matmul in-kernel.
    w_fused = jnp.zeros((3 * H2, 3 * C), jnp.float32)
    for m in range(3):
        w_fused = w_fused.at[m * H2:(m + 1) * H2, m * C:(m + 1) * C].set(weights[m])
    b_fused = biases.reshape(3 * H2, 1).astype(jnp.float32)

    kernel = functools.partial(
        _mi_kernel, float(bce_scale), float(kl_scale), H, int(N), bool(needs_mask))

    feat_spec = pl.BlockSpec((1, C, tile_n), lambda b, n: (b, 0, n))
    eps_spec = pl.BlockSpec((1, H, tile_n), lambda b, n: (b, 0, n))
    # Constant index maps: fused weight/bias stay resident, not re-DMA'd.
    w_spec = pl.BlockSpec((3 * H2, 3 * C), lambda b, n: (0, 0))
    b_spec = pl.BlockSpec((3 * H2, 1), lambda b, n: (0, 0))
    z_spec = pl.BlockSpec((1, H, tile_n), lambda b, n: (b, 0, n))
    loss_spec = pl.BlockSpec((1, 1, 8, 128), lambda b, n: (b, n, 0, 0))

    z_rgb, z_pt, z_ev, loss_part = pl.pallas_call(
        kernel,
        grid=(B, num_n),
        in_specs=[feat_spec, feat_spec, feat_spec,
                  eps_spec, eps_spec, eps_spec,
                  w_spec, b_spec],
        out_specs=[z_spec, z_spec, z_spec, loss_spec],
        out_shape=[jax.ShapeDtypeStruct((B, H, N), jnp.float32),
                   jax.ShapeDtypeStruct((B, H, N), jnp.float32),
                   jax.ShapeDtypeStruct((B, H, N), jnp.float32),
                   jax.ShapeDtypeStruct((B, num_n, 8, 128), jnp.float32)],
        compiler_params=pltpu.CompilerParams(
            dimension_semantics=("parallel", "parallel")),
    )(rgb_feat, point_feat, event_feat, eps_rgb, eps_point, eps_event,
      w_fused, b_fused)

    latent_loss = jnp.sum(loss_part)     # true partials -> plain sum is exact
    return latent_loss, z_rgb, z_pt, z_ev


def init_params(key, input_channels, hidden_channels):
    """Deterministic init matching six kernel_size=1 Conv1d layers, packed as
    (3, 2H, C) weights and (3, 2H, 1) biases.  Per modality (rgb, point, event)
    the first H rows are the mu head and the last H rows the logvar head."""
    kw, kb = jax.random.split(key)
    bound = 1.0 / jnp.sqrt(jnp.float32(input_channels))
    weights = jax.random.uniform(
        kw, (3, 2 * hidden_channels, input_channels), jnp.float32, -bound, bound)
    biases = jax.random.uniform(
        kb, (3, 2 * hidden_channels, 1), jnp.float32, -bound, bound)
    return weights, biases


def _reference(rgb, pt, ev, weights, biases, eps_rgb, eps_pt, eps_ev):
    """Pure-JAX port of the PyTorch forward for a correctness check."""
    B, C, N = rgb.shape
    H = weights.shape[1] // 2

    def l2n(x):
        return x / jnp.sqrt(jnp.sum(x * x, axis=1, keepdims=True) + 1e-6)

    def heads(x, idx):
        y = jnp.einsum("hc,bcn->bhn", weights[idx], x,
                       precision=jax.lax.Precision.HIGHEST) + biases[idx][None]
        y = jnp.tanh(y)
        return y[:, :H], y[:, H:]

    xr, xp, xe = l2n(rgb), l2n(pt), l2n(ev)
    mu_r, lv_r = heads(xr, 0)
    mu_p, lv_p = heads(xp, 1)
    mu_e, lv_e = heads(xe, 2)

    def rep(mu, lv, eps):
        return eps * jnp.exp(0.5 * lv) + mu

    z_r, z_p, z_e = rep(mu_r, lv_r, eps_rgb), rep(mu_p, lv_p, eps_pt), rep(mu_e, lv_e, eps_ev)
    s_r, s_p, s_e = jax.nn.sigmoid(z_r), jax.nn.sigmoid(z_p), jax.nn.sigmoid(z_e)

    def bce(p, t):
        lp = jnp.maximum(jnp.log(p), -100.0)
        l1 = jnp.maximum(jnp.log(1.0 - p), -100.0)
        return -jnp.mean(t * lp + (1.0 - t) * l1)

    def kl_mean(mu_a, lv_a, mu_b, lv_b):
        va, vb = jnp.exp(2.0 * lv_a), jnp.exp(2.0 * lv_b)
        kl = (lv_b - lv_a) + (va + (mu_a - mu_b) ** 2) / (2.0 * vb) - 0.5
        return jnp.mean(jnp.sum(kl, axis=-1))

    loss = (bce(s_r, s_p) + bce(s_p, s_r) + bce(s_r, s_e) + bce(s_e, s_r)
            + bce(s_p, s_e) + bce(s_e, s_p)
            - (kl_mean(mu_r, lv_r, mu_p, lv_p) + kl_mean(mu_p, lv_p, mu_r, lv_r))
            - (kl_mean(mu_e, lv_e, mu_p, lv_p) + kl_mean(mu_p, lv_p, mu_e, lv_e))
            - (kl_mean(mu_r, lv_r, mu_e, lv_e) + kl_mean(mu_e, lv_e, mu_r, lv_r))) / N
    return loss, z_r, z_p, z_e


if __name__ == "__main__":
    B, C, N, H = 2, 8, 128, 32  # batch, input_channels, points, hidden_channels

    key = jax.random.PRNGKey(0)
    k_rgb, k_pt, k_ev, k_par, k_e1, k_e2, k_e3 = jax.random.split(key, 7)

    rgb_feat = jax.random.normal(k_rgb, (B, C, N), jnp.float32)
    point_feat = jax.random.normal(k_pt, (B, C, N), jnp.float32)
    event_feat = jax.random.normal(k_ev, (B, C, N), jnp.float32)

    weights, biases = init_params(k_par, C, H)

    # TODO(synk): reparametrize noise is drawn with jax.random instead of
    # torch.cuda.FloatTensor().normal_(); distributions match, bit-streams don't.
    eps_rgb = jax.random.normal(k_e1, (B, H, N), jnp.float32)
    eps_point = jax.random.normal(k_e2, (B, H, N), jnp.float32)
    eps_event = jax.random.normal(k_e3, (B, H, N), jnp.float32)

    fn = jax.jit(mutual_info_reg_3d_event)
    latent_loss, z_rgb, z_point, z_event = fn(
        rgb_feat, point_feat, event_feat, weights, biases,
        eps_rgb, eps_point, eps_event)
    jax.block_until_ready((latent_loss, z_rgb, z_point, z_event))

    assert latent_loss.shape == ()
    assert z_rgb.shape == (B, H, N) and z_point.shape == (B, H, N) \
        and z_event.shape == (B, H, N)

    # Correctness check against a pure-JAX reference of the PyTorch module.
    ref_loss, ref_zr, ref_zp, ref_ze = _reference(
        rgb_feat, point_feat, event_feat, weights, biases,
        eps_rgb, eps_point, eps_event)
    assert jnp.allclose(z_rgb, ref_zr, atol=1e-3, rtol=1e-3)
    assert jnp.allclose(z_point, ref_zp, atol=1e-3, rtol=1e-3)
    assert jnp.allclose(z_event, ref_ze, atol=1e-3, rtol=1e-3)
    assert jnp.allclose(latent_loss, ref_loss, atol=1e-3, rtol=1e-3)

    print("KERNEL_OK")
</pallas_src>

<mosaic_0001>
module attributes {stable_mosaic.version = 11 : i64} {
  func.func @_mi_kernel(%arg0: i32, %arg1: i32, %arg2: memref<1x8x128xf32, #tpu.memory_space<vmem>>, %arg3: memref<1x8x128xf32, #tpu.memory_space<vmem>>, %arg4: memref<1x8x128xf32, #tpu.memory_space<vmem>>, %arg5: memref<1x32x128xf32, #tpu.memory_space<vmem>>, %arg6: memref<1x32x128xf32, #tpu.memory_space<vmem>>, %arg7: memref<1x32x128xf32, #tpu.memory_space<vmem>>, %arg8: memref<192x24xf32, #tpu.memory_space<vmem>>, %arg9: memref<192x1xf32, #tpu.memory_space<vmem>>, %arg10: memref<1x32x128xf32, #tpu.memory_space<vmem>>, %arg11: memref<1x32x128xf32, #tpu.memory_space<vmem>>, %arg12: memref<1x32x128xf32, #tpu.memory_space<vmem>>, %arg13: memref<1x1x8x128xf32, #tpu.memory_space<vmem>>) attributes {dimension_semantics = [#tpu.dimension_semantics<parallel>, #tpu.dimension_semantics<parallel>], iteration_bounds = array<i64: 2, 1>, scalar_prefetch = 0 : i64, scratch_operands = 0 : i64, tpu.core_type = #tpu.core_type<tc>, window_params = [{transform_indices = @transform_0, window_bounds = array<i64: 1, 8, 128>}, {transform_indices = @transform_1, window_bounds = array<i64: 1, 8, 128>}, {transform_indices = @transform_2, window_bounds = array<i64: 1, 8, 128>}, {transform_indices = @transform_3, window_bounds = array<i64: 1, 32, 128>}, {transform_indices = @transform_4, window_bounds = array<i64: 1, 32, 128>}, {transform_indices = @transform_5, window_bounds = array<i64: 1, 32, 128>}, {pipeline_mode = #tpu.pipeline_mode<synchronous>, transform_indices = @transform_6, window_bounds = array<i64: 192, 24>}, {pipeline_mode = #tpu.pipeline_mode<synchronous>, transform_indices = @transform_7, window_bounds = array<i64: 192, 1>}, {transform_indices = @transform_8, window_bounds = array<i64: 1, 32, 128>}, {transform_indices = @transform_9, window_bounds = array<i64: 1, 32, 128>}, {transform_indices = @transform_10, window_bounds = array<i64: 1, 32, 128>}, {transform_indices = @transform_11, window_bounds = array<i64: 1, 1, 8, 128>}]} {
    %c0 = arith.constant 0 : index
    %c0_0 = arith.constant 0 : index
    %c0_1 = arith.constant 0 : index
    %0 = vector.load %arg2[%c0, %c0_0, %c0_1] : memref<1x8x128xf32, #tpu.memory_space<vmem>>, vector<1x8x128xf32>
    %1 = vector.shape_cast %0 : vector<1x8x128xf32> to vector<8x128xf32>
    %2 = arith.mulf %1, %1 : vector<8x128xf32>
    %cst = arith.constant dense<0.000000e+00> : vector<128xf32>
    %3 = vector.multi_reduction <add>, %2, %cst [0] : vector<8x128xf32> to vector<128xf32>
    %4 = vector.shape_cast %3 : vector<128xf32> to vector<1x128xf32>
    %cst_2 = arith.constant 9.99999997E-7 : f32
    %5 = vector.broadcast %cst_2 : f32 to vector<1x128xf32>
    %6 = arith.addf %4, %5 : vector<1x128xf32>
    %7 = math.rsqrt %6 : vector<1x128xf32>
    %8 = vector.broadcast %7 : vector<1x128xf32> to vector<8x128xf32>
    %9 = arith.mulf %1, %8 : vector<8x128xf32>
    %c0_3 = arith.constant 0 : index
    %c0_4 = arith.constant 0 : index
    %c0_5 = arith.constant 0 : index
    %10 = vector.load %arg3[%c0_3, %c0_4, %c0_5] : memref<1x8x128xf32, #tpu.memory_space<vmem>>, vector<1x8x128xf32>
    %11 = vector.shape_cast %10 : vector<1x8x128xf32> to vector<8x128xf32>
    %12 = arith.mulf %11, %11 : vector<8x128xf32>
    %cst_6 = arith.constant dense<0.000000e+00> : vector<128xf32>
    %13 = vector.multi_reduction <add>, %12, %cst_6 [0] : vector<8x128xf32> to vector<128xf32>
    %14 = vector.shape_cast %13 : vector<128xf32> to vector<1x128xf32>
    %cst_7 = arith.constant 9.99999997E-7 : f32
    %15 = vector.broadcast %cst_7 : f32 to vector<1x128xf32>
    %16 = arith.addf %14, %15 : vector<1x128xf32>
    %17 = math.rsqrt %16 : vector<1x128xf32>
    %18 = vector.broadcast %17 : vector<1x128xf32> to vector<8x128xf32>
    %19 = arith.mulf %11, %18 : vector<8x128xf32>
    %c0_8 = arith.constant 0 : index
    %c0_9 = arith.constant 0 : index
    %c0_10 = arith.constant 0 : index
    %20 = vector.load %arg4[%c0_8, %c0_9, %c0_10] : memref<1x8x128xf32, #tpu.memory_space<vmem>>, vector<1x8x128xf32>
    %21 = vector.shape_cast %20 : vector<1x8x128xf32> to vector<8x128xf32>
    %22 = arith.mulf %21, %21 : vector<8x128xf32>
    %cst_11 = arith.constant dense<0.000000e+00> : vector<128xf32>
    %23 = vector.multi_reduction <add>, %22, %cst_11 [0] : vector<8x128xf32> to vector<128xf32>
    %24 = vector.shape_cast %23 : vector<128xf32> to vector<1x128xf32>
    %cst_12 = arith.constant 9.99999997E-7 : f32
    %25 = vector.broadcast %cst_12 : f32 to vector<1x128xf32>
    %26 = arith.addf %24, %25 : vector<1x128xf32>
    %27 = math.rsqrt %26 : vector<1x128xf32>
    %28 = vector.broadcast %27 : vector<1x128xf32> to vector<8x128xf32>
    %29 = arith.mulf %21, %28 : vector<8x128xf32>
    %30 = tpu.concatenate %9, %19, %29 in 0 : vector<8x128xf32>, vector<8x128xf32>, vector<8x128xf32> -> vector<24x128xf32>
    %c0_13 = arith.constant 0 : index
    %c0_14 = arith.constant 0 : index
    %31 = vector.load %arg8[%c0_13, %c0_14] : memref<192x24xf32, #tpu.memory_space<vmem>>, vector<192x24xf32>
    %cst_15 = arith.constant dense<0.000000e+00> : vector<192x128xf32>
    %32 = tpu.matmul %31, %30, %cst_15 {dimension_numbers = #tpu.dot_dimension_numbers<[1], [0], [0], [1], [0, 0, 1, 1], [], []>} : vector<192x24xf32>, vector<24x128xf32>, vector<192x128xf32> -> vector<192x128xf32>
    %c0_16 = arith.constant 0 : index
    %c0_17 = arith.constant 0 : index
    %33 = vector.load %arg9[%c0_16, %c0_17] : memref<192x1xf32, #tpu.memory_space<vmem>>, vector<192x1xf32>
    %34 = vector.broadcast %33 : vector<192x1xf32> to vector<192x128xf32>
    %35 = arith.addf %32, %34 : vector<192x128xf32>
    %36 = math.tanh %35 : vector<192x128xf32>
    %37 = vector.extract_strided_slice %36 {offsets = [0, 0], sizes = [32, 128], strides = [1, 1]} : vector<192x128xf32> to vector<32x128xf32>
    %38 = vector.extract_strided_slice %36 {offsets = [32, 0], sizes = [32, 128], strides = [1, 1]} : vector<192x128xf32> to vector<32x128xf32>
    %cst_18 = arith.constant 5.000000e-01 : f32
    %39 = vector.broadcast %cst_18 : f32 to vector<32x128xf32>
    %40 = arith.mulf %39, %38 : vector<32x128xf32>
    %41 = math.exp %40 : vector<32x128xf32>
    %c0_19 = arith.constant 0 : index
    %c0_20 = arith.constant 0 : index
    %c0_21 = arith.constant 0 : index
    %42 = vector.load %arg5[%c0_19, %c0_20, %c0_21] : memref<1x32x128xf32, #tpu.memory_space<vmem>>, vector<1x32x128xf32>
    %43 = vector.shape_cast %42 : vector<1x32x128xf32> to vector<32x128xf32>
    %44 = arith.mulf %43, %41 : vector<32x128xf32>
    %45 = arith.addf %44, %37 : vector<32x128xf32>
    %c0_22 = arith.constant 0 : index
    %c0_23 = arith.constant 0 : index
    %c0_24 = arith.constant 0 : index
    %46 = vector.load %arg10[%c0_22, %c0_23, %c0_24] : memref<1x32x128xf32, #tpu.memory_space<vmem>>, vector<1x32x128xf32>
    %47 = vector.shape_cast %46 : vector<1x32x128xf32> to vector<32x128xf32>
    %48 = vector.shape_cast %45 : vector<32x128xf32> to vector<1x32x128xf32>
    tpu.vector_store %arg10[%c0_22, %c0_23, %c0_24], %48 {strides = array<i32>} : memref<1x32x128xf32, #tpu.memory_space<vmem>>, vector<1x32x128xf32>,
    %49 = arith.mulf %41, %41 : vector<32x128xf32>
    %50 = arith.mulf %49, %49 : vector<32x128xf32>
    %51 = tpu.reciprocal %50 {approx = true} : vector<32x128xf32> -> vector<32x128xf32>
    %cst_25 = arith.constant 5.000000e-01 : f32
    %52 = vector.broadcast %cst_25 : f32 to vector<32x128xf32>
    %53 = arith.mulf %52, %51 : vector<32x128xf32>
    %54 = math.exp %45 : vector<32x128xf32>
    %cst_26 = arith.constant 1.000000e+00 : f32
    %55 = vector.broadcast %cst_26 : f32 to vector<32x128xf32>
    %56 = arith.addf %55, %54 : vector<32x128xf32>
    %57 = tpu.reciprocal %56 {approx = true} : vector<32x128xf32> -> vector<32x128xf32>
    %58 = arith.mulf %54, %57 : vector<32x128xf32>
    %cst_27 = arith.constant 1.000000e+00 : f32
    %59 = vector.broadcast %cst_27 : f32 to vector<32x128xf32>
    %60 = arith.addf %59, %54 : vector<32x128xf32>
    %61 = math.log %60 : vector<32x128xf32>
    %62 = arith.subf %45, %61 : vector<32x128xf32>
    %cst_28 = arith.constant -1.000000e+02 : f32
    %63 = vector.broadcast %cst_28 : f32 to vector<32x128xf32>
    %64 = arith.maximumf %62, %63 : vector<32x128xf32>
    %cst_29 = arith.constant 0.000000e+00 : f32
    %65 = vector.broadcast %cst_29 : f32 to vector<32x128xf32>
    %66 = arith.subf %65, %61 : vector<32x128xf32>
    %cst_30 = arith.constant -1.000000e+02 : f32
    %67 = vector.broadcast %cst_30 : f32 to vector<32x128xf32>
    %68 = arith.maximumf %66, %67 : vector<32x128xf32>
    %69 = vector.extract_strided_slice %36 {offsets = [64, 0], sizes = [32, 128], strides = [1, 1]} : vector<192x128xf32> to vector<32x128xf32>
    %70 = vector.extract_strided_slice %36 {offsets = [96, 0], sizes = [32, 128], strides = [1, 1]} : vector<192x128xf32> to vector<32x128xf32>
    %cst_31 = arith.constant 5.000000e-01 : f32
    %71 = vector.broadcast %cst_31 : f32 to vector<32x128xf32>
    %72 = arith.mulf %71, %70 : vector<32x128xf32>
    %73 = math.exp %72 : vector<32x128xf32>
    %c0_32 = arith.constant 0 : index
    %c0_33 = arith.constant 0 : index
    %c0_34 = arith.constant 0 : index
    %74 = vector.load %arg6[%c0_32, %c0_33, %c0_34] : memref<1x32x128xf32, #tpu.memory_space<vmem>>, vector<1x32x128xf32>
    %75 = vector.shape_cast %74 : vector<1x32x128xf32> to vector<32x128xf32>
    %76 = arith.mulf %75, %73 : vector<32x128xf32>
    %77 = arith.addf %76, %69 : vector<32x128xf32>
    %c0_35 = arith.constant 0 : index
    %c0_36 = arith.constant 0 : index
    %c0_37 = arith.constant 0 : index
    %78 = vector.load %arg11[%c0_35, %c0_36, %c0_37] : memref<1x32x128xf32, #tpu.memory_space<vmem>>, vector<1x32x128xf32>
    %79 = vector.shape_cast %78 : vector<1x32x128xf32> to vector<32x128xf32>
    %80 = vector.shape_cast %77 : vector<32x128xf32> to vector<1x32x128xf32>
    tpu.vector_store %arg11[%c0_35, %c0_36, %c0_37], %80 {strides = array<i32>} : memref<1x32x128xf32, #tpu.memory_space<vmem>>, vector<1x32x128xf32>,
    %81 = arith.mulf %73, %73 : vector<32x128xf32>
    %82 = arith.mulf %81, %81 : vector<32x128xf32>
    %83 = tpu.reciprocal %82 {approx = true} : vector<32x128xf32> -> vector<32x128xf32>
    %cst_38 = arith.constant 5.000000e-01 : f32
    %84 = vector.broadcast %cst_38 : f32 to vector<32x128xf32>
    %85 = arith.mulf %84, %83 : vector<32x128xf32>
    %86 = math.exp %77 : vector<32x128xf32>
    %cst_39 = arith.constant 1.000000e+00 : f32
    %87 = vector.broadcast %cst_39 : f32 to vector<32x128xf32>
    %88 = arith.addf %87, %86 : vector<32x128xf32>
    %89 = tpu.reciprocal %88 {approx = true} : vector<32x128xf32> -> vector<32x128xf32>
    %90 = arith.mulf %86, %89 : vector<32x128xf32>
    %cst_40 = arith.constant 1.000000e+00 : f32
    %91 = vector.broadcast %cst_40 : f32 to vector<32x128xf32>
    %92 = arith.addf %91, %86 : vector<32x128xf32>
    %93 = math.log %92 : vector<32x128xf32>
    %94 = arith.subf %77, %93 : vector<32x128xf32>
    %cst_41 = arith.constant -1.000000e+02 : f32
    %95 = vector.broadcast %cst_41 : f32 to vector<32x128xf32>
    %96 = arith.maximumf %94, %95 : vector<32x128xf32>
    %cst_42 = arith.constant 0.000000e+00 : f32
    %97 = vector.broadcast %cst_42 : f32 to vector<32x128xf32>
    %98 = arith.subf %97, %93 : vector<32x128xf32>
    %cst_43 = arith.constant -1.000000e+02 : f32
    %99 = vector.broadcast %cst_43 : f32 to vector<32x128xf32>
    %100 = arith.maximumf %98, %99 : vector<32x128xf32>
    %101 = vector.extract_strided_slice %36 {offsets = [128, 0], sizes = [32, 128], strides = [1, 1]} : vector<192x128xf32> to vector<32x128xf32>
    %102 = vector.extract_strided_slice %36 {offsets = [160, 0], sizes = [32, 128], strides = [1, 1]} : vector<192x128xf32> to vector<32x128xf32>
    %cst_44 = arith.constant 5.000000e-01 : f32
    %103 = vector.broadcast %cst_44 : f32 to vector<32x128xf32>
    %104 = arith.mulf %103, %102 : vector<32x128xf32>
    %105 = math.exp %104 : vector<32x128xf32>
    %c0_45 = arith.constant 0 : index
    %c0_46 = arith.constant 0 : index
    %c0_47 = arith.constant 0 : index
    %106 = vector.load %arg7[%c0_45, %c0_46, %c0_47] : memref<1x32x128xf32, #tpu.memory_space<vmem>>, vector<1x32x128xf32>
    %107 = vector.shape_cast %106 : vector<1x32x128xf32> to vector<32x128xf32>
    %108 = arith.mulf %107, %105 : vector<32x128xf32>
    %109 = arith.addf %108, %101 : vector<32x128xf32>
    %c0_48 = arith.constant 0 : index
    %c0_49 = arith.constant 0 : index
    %c0_50 = arith.constant 0 : index
    %110 = vector.load %arg12[%c0_48, %c0_49, %c0_50] : memref<1x32x128xf32, #tpu.memory_space<vmem>>, vector<1x32x128xf32>
    %111 = vector.shape_cast %110 : vector<1x32x128xf32> to vector<32x128xf32>
    %112 = vector.shape_cast %109 : vector<32x128xf32> to vector<1x32x128xf32>
    tpu.vector_store %arg12[%c0_48, %c0_49, %c0_50], %112 {strides = array<i32>} : memref<1x32x128xf32, #tpu.memory_space<vmem>>, vector<1x32x128xf32>,
    %113 = arith.mulf %105, %105 : vector<32x128xf32>
    %114 = arith.mulf %113, %113 : vector<32x128xf32>
    %115 = tpu.reciprocal %114 {approx = true} : vector<32x128xf32> -> vector<32x128xf32>
    %cst_51 = arith.constant 5.000000e-01 : f32
    %116 = vector.broadcast %cst_51 : f32 to vector<32x128xf32>
    %117 = arith.mulf %116, %115 : vector<32x128xf32>
    %118 = math.exp %109 : vector<32x128xf32>
    %cst_52 = arith.constant 1.000000e+00 : f32
    %119 = vector.broadcast %cst_52 : f32 to vector<32x128xf32>
    %120 = arith.addf %119, %118 : vector<32x128xf32>
    %121 = tpu.reciprocal %120 {approx = true} : vector<32x128xf32> -> vector<32x128xf32>
    %122 = arith.mulf %118, %121 : vector<32x128xf32>
    %cst_53 = arith.constant 1.000000e+00 : f32
    %123 = vector.broadcast %cst_53 : f32 to vector<32x128xf32>
    %124 = arith.addf %123, %118 : vector<32x128xf32>
    %125 = math.log %124 : vector<32x128xf32>
    %126 = arith.subf %109, %125 : vector<32x128xf32>
    %cst_54 = arith.constant -1.000000e+02 : f32
    %127 = vector.broadcast %cst_54 : f32 to vector<32x128xf32>
    %128 = arith.maximumf %126, %127 : vector<32x128xf32>
    %cst_55 = arith.constant 0.000000e+00 : f32
    %129 = vector.broadcast %cst_55 : f32 to vector<32x128xf32>
    %130 = arith.subf %129, %125 : vector<32x128xf32>
    %cst_56 = arith.constant -1.000000e+02 : f32
    %131 = vector.broadcast %cst_56 : f32 to vector<32x128xf32>
    %132 = arith.maximumf %130, %131 : vector<32x128xf32>
    %133 = arith.addf %58, %90 : vector<32x128xf32>
    %134 = arith.addf %133, %122 : vector<32x128xf32>
    %135 = arith.subf %134, %58 : vector<32x128xf32>
    %136 = arith.subf %134, %90 : vector<32x128xf32>
    %137 = arith.subf %134, %122 : vector<32x128xf32>
    %138 = arith.mulf %135, %64 : vector<32x128xf32>
    %cst_57 = arith.constant 2.000000e+00 : f32
    %139 = vector.broadcast %cst_57 : f32 to vector<32x128xf32>
    %140 = arith.subf %139, %135 : vector<32x128xf32>
    %141 = arith.mulf %140, %68 : vector<32x128xf32>
    %142 = arith.addf %138, %141 : vector<32x128xf32>
    %143 = arith.mulf %136, %96 : vector<32x128xf32>
    %144 = arith.addf %142, %143 : vector<32x128xf32>
    %cst_58 = arith.constant 2.000000e+00 : f32
    %145 = vector.broadcast %cst_58 : f32 to vector<32x128xf32>
    %146 = arith.subf %145, %136 : vector<32x128xf32>
    %147 = arith.mulf %146, %100 : vector<32x128xf32>
    %148 = arith.addf %144, %147 : vector<32x128xf32>
    %149 = arith.mulf %137, %128 : vector<32x128xf32>
    %150 = arith.addf %148, %149 : vector<32x128xf32>
    %cst_59 = arith.constant 2.000000e+00 : f32
    %151 = vector.broadcast %cst_59 : f32 to vector<32x128xf32>
    %152 = arith.subf %151, %137 : vector<32x128xf32>
    %153 = arith.mulf %152, %132 : vector<32x128xf32>
    %154 = arith.addf %150, %153 : vector<32x128xf32>
    %cst_60 = arith.constant 0.000000e+00 : f32
    %155 = vector.broadcast %cst_60 : f32 to vector<32x128xf32>
    %156 = arith.subf %155, %154 : vector<32x128xf32>
    %157 = arith.mulf %37, %37 : vector<32x128xf32>
    %158 = arith.mulf %69, %69 : vector<32x128xf32>
    %159 = arith.mulf %101, %101 : vector<32x128xf32>
    %160 = arith.addf %50, %82 : vector<32x128xf32>
    %161 = arith.addf %160, %114 : vector<32x128xf32>
    %162 = arith.addf %157, %158 : vector<32x128xf32>
    %163 = arith.addf %162, %159 : vector<32x128xf32>
    %164 = arith.addf %37, %69 : vector<32x128xf32>
    %165 = arith.addf %164, %101 : vector<32x128xf32>
    %cst_61 = arith.constant 2.000000e+00 : f32
    %166 = vector.broadcast %cst_61 : f32 to vector<32x128xf32>
    %167 = arith.mulf %166, %165 : vector<32x128xf32>
    %168 = arith.subf %161, %50 : vector<32x128xf32>
    %cst_62 = arith.constant 3.000000e+00 : f32
    %169 = vector.broadcast %cst_62 : f32 to vector<32x128xf32>
    %170 = arith.mulf %169, %157 : vector<32x128xf32>
    %171 = arith.addf %163, %170 : vector<32x128xf32>
    %172 = arith.mulf %37, %167 : vector<32x128xf32>
    %173 = arith.subf %171, %172 : vector<32x128xf32>
    %174 = arith.addf %168, %173 : vector<32x128xf32>
    %175 = arith.mulf %53, %174 : vector<32x128xf32>
    %176 = arith.subf %161, %82 : vector<32x128xf32>
    %cst_63 = arith.constant 3.000000e+00 : f32
    %177 = vector.broadcast %cst_63 : f32 to vector<32x128xf32>
    %178 = arith.mulf %177, %158 : vector<32x128xf32>
    %179 = arith.addf %163, %178 : vector<32x128xf32>
    %180 = arith.mulf %69, %167 : vector<32x128xf32>
    %181 = arith.subf %179, %180 : vector<32x128xf32>
    %182 = arith.addf %176, %181 : vector<32x128xf32>
    %183 = arith.mulf %85, %182 : vector<32x128xf32>
    %184 = arith.addf %175, %183 : vector<32x128xf32>
    %185 = arith.subf %161, %114 : vector<32x128xf32>
    %cst_64 = arith.constant 3.000000e+00 : f32
    %186 = vector.broadcast %cst_64 : f32 to vector<32x128xf32>
    %187 = arith.mulf %186, %159 : vector<32x128xf32>
    %188 = arith.addf %163, %187 : vector<32x128xf32>
    %189 = arith.mulf %101, %167 : vector<32x128xf32>
    %190 = arith.subf %188, %189 : vector<32x128xf32>
    %191 = arith.addf %185, %190 : vector<32x128xf32>
    %192 = arith.mulf %117, %191 : vector<32x128xf32>
    %193 = arith.addf %184, %192 : vector<32x128xf32>
    %cst_65 = arith.constant 3.000000e+00 : f32
    %194 = vector.broadcast %cst_65 : f32 to vector<32x128xf32>
    %195 = arith.subf %193, %194 : vector<32x128xf32>
    %cst_66 = arith.constant 9.53674316E-7 : f32
    %196 = vector.broadcast %cst_66 : f32 to vector<32x128xf32>
    %197 = arith.mulf %156, %196 : vector<32x128xf32>
    %cst_67 = arith.constant 1.22070313E-4 : f32
    %198 = vector.broadcast %cst_67 : f32 to vector<32x128xf32>
    %199 = arith.mulf %195, %198 : vector<32x128xf32>
    %200 = arith.subf %197, %199 : vector<32x128xf32>
    %201 = vector.extract_strided_slice %200 {offsets = [0, 0], sizes = [8, 128], strides = [1, 1]} : vector<32x128xf32> to vector<8x128xf32>
    %202 = vector.extract_strided_slice %200 {offsets = [8, 0], sizes = [8, 128], strides = [1, 1]} : vector<32x128xf32> to vector<8x128xf32>
    %203 = arith.addf %201, %202 : vector<8x128xf32>
    %204 = vector.extract_strided_slice %200 {offsets = [16, 0], sizes = [8, 128], strides = [1, 1]} : vector<32x128xf32> to vector<8x128xf32>
    %205 = arith.addf %203, %204 : vector<8x128xf32>
    %206 = vector.extract_strided_slice %200 {offsets = [24, 0], sizes = [8, 128], strides = [1, 1]} : vector<32x128xf32> to vector<8x128xf32>
    %207 = arith.addf %205, %206 : vector<8x128xf32>
    %c0_68 = arith.constant 0 : index
    %c0_69 = arith.constant 0 : index
    %c0_70 = arith.constant 0 : index
    %c0_71 = arith.constant 0 : index
    %208 = vector.load %arg13[%c0_68, %c0_69, %c0_70, %c0_71] : memref<1x1x8x128xf32, #tpu.memory_space<vmem>>, vector<1x1x8x128xf32>
    %209 = vector.shape_cast %208 : vector<1x1x8x128xf32> to vector<8x128xf32>
    %210 = vector.shape_cast %207 : vector<8x128xf32> to vector<1x1x8x128xf32>
    tpu.vector_store %arg13[%c0_68, %c0_69, %c0_70, %c0_71], %210 {strides = array<i32>} : memref<1x1x8x128xf32, #tpu.memory_space<vmem>>, vector<1x1x8x128xf32>,
    return
  }
  func.func @transform_0(%arg0: i32, %arg1: i32) -> (i32, i32, i32) {
    %c0_i32 = arith.constant 0 : i32
    %c0_i32_0 = arith.constant 0 : i32
    return %arg0, %c0_i32, %arg1 : i32, i32, i32
  }
  func.func @transform_1(%arg0: i32, %arg1: i32) -> (i32, i32, i32) {
    %c0_i32 = arith.constant 0 : i32
    %c0_i32_0 = arith.constant 0 : i32
    return %arg0, %c0_i32, %arg1 : i32, i32, i32
  }
  func.func @transform_2(%arg0: i32, %arg1: i32) -> (i32, i32, i32) {
    %c0_i32 = arith.constant 0 : i32
    %c0_i32_0 = arith.constant 0 : i32
    return %arg0, %c0_i32, %arg1 : i32, i32, i32
  }
  func.func @transform_3(%arg0: i32, %arg1: i32) -> (i32, i32, i32) {
    %c0_i32 = arith.constant 0 : i32
    %c0_i32_0 = arith.constant 0 : i32
    return %arg0, %c0_i32, %arg1 : i32, i32, i32
  }
  func.func @transform_4(%arg0: i32, %arg1: i32) -> (i32, i32, i32) {
    %c0_i32 = arith.constant 0 : i32
    %c0_i32_0 = arith.constant 0 : i32
    return %arg0, %c0_i32, %arg1 : i32, i32, i32
  }
  func.func @transform_5(%arg0: i32, %arg1: i32) -> (i32, i32, i32) {
    %c0_i32 = arith.constant 0 : i32
    %c0_i32_0 = arith.constant 0 : i32
    return %arg0, %c0_i32, %arg1 : i32, i32, i32
  }
  func.func @transform_6(%arg0: i32, %arg1: i32) -> (i32, i32) {
    %c0_i32 = arith.constant 0 : i32
    %c0_i32_0 = arith.constant 0 : i32
    %c0_i32_1 = arith.constant 0 : i32
    return %c0_i32, %c0_i32_0 : i32, i32
  }
  func.func @transform_7(%arg0: i32, %arg1: i32) -> (i32, i32) {
    %c0_i32 = arith.constant 0 : i32
    %c0_i32_0 = arith.constant 0 : i32
    %c0_i32_1 = arith.constant 0 : i32
    return %c0_i32, %c0_i32_0 : i32, i32
  }
  func.func @transform_8(%arg0: i32, %arg1: i32) -> (i32, i32, i32) {
    %c0_i32 = arith.constant 0 : i32
    %c0_i32_0 = arith.constant 0 : i32
    return %arg0, %c0_i32, %arg1 : i32, i32, i32
  }
  func.func @transform_9(%arg0: i32, %arg1: i32) -> (i32, i32, i32) {
    %c0_i32 = arith.constant 0 : i32
    %c0_i32_0 = arith.constant 0 : i32
    return %arg0, %c0_i32, %arg1 : i32, i32, i32
  }
  func.func @transform_10(%arg0: i32, %arg1: i32) -> (i32, i32, i32) {
    %c0_i32 = arith.constant 0 : i32
    %c0_i32_0 = arith.constant 0 : i32
    return %arg0, %c0_i32, %arg1 : i32, i32, i32
  }
  func.func @transform_11(%arg0: i32, %arg1: i32) -> (i32, i32, i32, i32) {
    %c0_i32 = arith.constant 0 : i32
    %c0_i32_0 = arith.constant 0 : i32
    %c0_i32_1 = arith.constant 0 : i32
    return %arg0, %arg1, %c0_i32, %c0_i32_0 : i32, i32, i32, i32
  }
}

</mosaic_0001>

<bundles_post_ra>
// kernel: mutual_info_reg_3d_event.1
= control target key start
LH: loop header
LB: loop body
LE: loop exit
PB: predicated region body
PF: predicated region fallthrough
CT: control target
= control target key end

     0   :  { %s3297_s0 = inlined_call_operand.vmem [shape: f32[2,8,128], index: 0, kind: input, shape index: {}]   ;;  %s3298_s1 = inlined_call_operand.vmem [shape: f32[2,8,128], index: 1, kind: input, shape index: {}]   ;;  %s3299_s2 = inlined_call_operand.vmem [shape: f32[2,8,128], index: 2, kind: input, shape index: {}]   ;;  %s3300_s3 = inlined_call_operand.vmem [shape: f32[2,32,128], index: 3, kind: input, shape index: {}]   ;;  %s3301_s4 = inlined_call_operand.vmem [shape: f32[2,32,128], index: 4, kind: input, shape index: {}]   ;;  %s3302_s5 = inlined_call_operand.vmem [shape: f32[2,32,128], index: 5, kind: input, shape index: {}]   ;;  %s3303_s6 = inlined_call_operand.vmem [shape: f32[192,24], index: 6, kind: input, shape index: {}]   ;;  %s3304_s7 = inlined_call_operand.vmem [shape: f32[192,1], index: 7, kind: input, shape index: {}]   ;;  %s3305_s8 = inlined_call_operand.hbm [shape: f32[2,32,128], index: 8, kind: output, shape index: {0}]   ;;  %s3306_s9 = inlined_call_operand.hbm [shape: f32[2,32,128], index: 9, kind: output, shape index: {1}]   ;;  %s3307_s10 = inlined_call_operand.hbm [shape: f32[2,32,128], index: 10, kind: output, shape index: {2}]   ;;  %s3308_s11 = inlined_call_operand.vmem [shape: f32[2,1,8,128], index: 11, kind: output, shape index: {3}]  }
   0x1   :  { %3318 = sst [smem:[#allocation19_spill]] %s3297_s0 }
   0x2   :  { %17 = vsyncpa [#allocation3], 0 }
   0x3   :  { %19 = vsyncpa [#allocation3 + $0x1], 0 }
   0x4   :  { %20 = vsyncpa [#allocation5], 0 }
   0x5   :  { %22 = vsyncpa [#allocation5 + $0x1], 0  ;;  %s2356_s17 = smov 0   ;;  %s2358_s18 = smov 0  }
   0x6   :  { %s2360_s19 = smov 0   ;;  %s2362_s20 = smov 0  }
   0x7   :  { %s2364_s21 = smov 0   ;;  %s2366_s22 = smov 0  }
   0x8 LB: > { %3319 = sst [smem:[#allocation9_spill]] %s2271_s17  ;;  %s3310_s23 = sadd.s32 4294967295, %s2291_s22   ;;  %s2291_s22 = sphi %s2366_s22, %s28_s22   ;;  %s2287_s21 = sphi %s2364_s21, %s3343_s21   ;;  %s2283_s20 = sphi %s2362_s20, %s3342_s20   ;;  %s2279_s19 = sphi %s2360_s19, %s3341_s19   ;;  %s2275_s18 = sphi %s2358_s18, %s3345_s18   ;;  %s2271_s17 = sphi %s2356_s17, %s3344_s17  }
   0x9   : > { %3320 = sst [smem:[#allocation10_spill]] %s2279_s19  ;;  %s3309_s24 = sadd.s32 4294967294, %s2291_s22  }
   0xa   : > { %3321 = sst [smem:[#allocation11_spill]] %s2287_s21  ;;  %s40_s25 = sadd.s32 1, %s2287_s21 }
   0xb   : > { %s259_s26 = sadd.s32 1, %s2279_s19  ;;  %p42_p0 = scmp.ge.s32.totalorder %s40_s25, 2 }
   0xc   : > { %p269_p1 = scmp.ne.s32.totalorder %s2279_s19, %s2275_s18  ;;  %p270_p2 = scmp.eq.s32.totalorder %s3310_s23, 1 }
   0xd   : > { %p275_p3 = scmp.ne.s32.totalorder %s2275_s18, %s2271_s17  ;;  %s3347_s25 = smov (%p42_p0, %s40_s25), 0 }
   0xe   : > { %3322 = sst [smem:[#allocation12_spill]] %s3347_s25  ;;  %p2398_p4 = por %p270_p2, %p269_p1 }
   0xf   : > { %p276_p5 = scmp.eq.s32.totalorder %s3309_s24, 1  ;;  %s254_s28 = ssub.s32 %s2287_s21, %s3347_s25 }
  0x10   : > { %p1840_p6 = scmp.ge.s32.totalorder %s2291_s22, 1  ;;  %p257_p7 = scmp.eq.s32.totalorder %s254_s28, 0 }
  0x11   : > { %p2407_p8 = por %p276_p5, %p275_p3  ;;  %p447_p9 = scmp.lt.s32.totalorder %s2291_s22, 3 }
  0x12   : > { %s2413_s30 = scalar_select %p257_p7, %s2279_s19, %s259_s26  }
  0x13   : > { %s3324_s29 = scalar_select %p2407_p8, 1, 0 }
  0x14   : > { %3326 = sst [smem:[#allocation14_spill]] %s2413_s30  ;;  %p448_p10 = pnand %p1840_p6, %p447_p9 }
  0x15   : > { %3325 = sst [smem:[#allocation13_spill]] %s3324_s29 }
  0x16   : > { %451 = sbr.rel (%p448_p10) target bundleno = 393 (0x189), region = 52 }
  0x1b   : > { %v682_v0 = vld [vmem:[%s3304_s7 + $0x10] sm:$0xff]  ;;  %v680_v1 = vld [vmem:[%s3304_s7] sm:$0xff]  ;;  %p544_p11 = scmp.lt.s32.totalorder %s2283_s20, 1  ;;  %v2293_v2 = vmov 0   ;;  %v683_v4 = vld [vmem:[%s3304_s7 + $0x18] sm:$0xff]  ;;  %s3327_s0 = sld [smem:[#allocation19_spill]] }
  0x1c   : > { %1977 = vset.pattern.permute.xlu1 %v2293_v2  ;;  %1976 = vset.pattern.permute.xlu0 %v2293_v2  ;;  %v684_v3 = vld [vmem:[%s3304_s7 + $0x20] sm:$0xff]  ;;  %v681_v6 = vld [vmem:[%s3304_s7 + $0x8] sm:$0xff]  ;;  %v686_v28 = vld [vmem:[%s3304_s7 + $0x30] sm:$0xff]  ;;  %vm824_vm9 = vcmask 195584   ;;  %s2941_s14 = sshll.u32 %s2283_s20, 5 }
  0x1d   : > { %716 = vperm.xlu1 %1977, %v682_v0   ;;  %706 = vperm.xlu0 %1976, %v680_v1   ;;  %s2426_s28 = scalar_select %p544_p11, %s2283_s20, 1  ;;  %v685_v12 = vld [vmem:[%s3304_s7 + $0x28] sm:$0xff]  ;;  %v692_v23 = vld [vmem:[%s3304_s7 + $0x60] sm:$0xff]  ;;  %v694_v38 = vld [vmem:[%s3304_s7 + $0x70] sm:$0xff] }
  0x1e   : > { %1978 = vset.pattern.permute.xlu2 %v2293_v2  ;;  %v693_v22 = vld [vmem:[%s3304_s7 + $0x68] sm:$0xff]  ;;  %v700_v37 = vld [vmem:[%s3304_s7 + $0xa0] sm:$0xff]  ;;  %v695_v44 = vld [vmem:[%s3304_s7 + $0x78] sm:$0xff]  ;;  %s2173_s20 = scalar_lea.hbm %s3305_s8, 64 }
  0x1f   : > { %726 = vperm.xlu2 %1978, %v684_v3   ;;  %s2429_s12 = sshll.u32 %s2426_s28, 3  ;;  %v701_v39 = vld [vmem:[%s3304_s7 + $0xa8] sm:$0xff]  ;;  %v687_v45 = vld [vmem:[%s3304_s7 + $0x38] sm:$0xff]  ;;  %v702_v50 = vld [vmem:[%s3304_s7 + $0xb0] sm:$0xff]  ;;  %s2634_s13 = sshll.u32 %s2426_s28, 5 }
  0x20   : > { %s564_s15 = scalar_lea.vmem %s3299_s2, %s2429_s12  ;;  %s557_s25 = scalar_lea.vmem %s3298_s1, %s2429_s12  ;;  %v688_v59 = vld [vmem:[%s3304_s7 + $0x40] sm:$0xff]  ;;  %v703_v60 = vld [vmem:[%s3304_s7 + $0xb8] sm:$0xff] }
  0x21   : > { %v2438_v5 = vld [vmem:[%s564_s15] sm:$0xff]  ;;  %s550_s19 = scalar_lea.vmem %s3327_s0, %s2429_s12  ;;  %s2642_s16 = scalar_lea.vmem %s3300_s3, %s2634_s13 }
  0x22   : > { %v637_v7 = vmul.f32 %v2438_v5, %v2438_v5  ;;  %v2453_v8 = vld [vmem:[%s557_s25] sm:$0xff]  ;;  %s518_s28 = sand.u32 1, %s2275_s18   ;;  %s2743_s29 = scalar_lea.vmem %s3302_s5, %s2634_s13 }
  0x23   : > { %v2455_v9 = vld [vmem:[%s550_s19] sm:$0xff]  ;;  %v617_v10 = vmul.f32 %v2453_v8, %v2453_v8  ;;  %s2651_s26 = sshll.u32 %s518_s28, 5  ;;  %s2695_s19 = scalar_lea.vmem %s3301_s4, %s2634_s13 }
  0x24   : > { %v597_v11 = vmul.f32 %v2455_v9, %v2455_v9  ;;  %v638_v13 = vrot.slane %v637_v7, 4  ;;  %s2678_s23 = scalar_lea.vmem [#allocation2], %s2651_s26  ;;  %s2794_s30 = scalar_lea.vmem [#allocation4], %s2651_s26 }
  0x25   : > { %721 = vperm.xlu1 %1977, %v683_v4   ;;  %711 = vperm.xlu0 %1976, %v681_v6   ;;  %v618_v14 = vrot.slane %v617_v10, 4  ;;  %v662_v6 = vld [vmem:[%s3303_s6 + $0x30] sm:$0xff]  ;;  %s2810_s13 = scalar_lea.vmem [#allocation6], %s2651_s26  ;;  %s1536_s26 = scalar_lea.hbm %s3305_s8, %s2941_s14 }
  0x26   : > { %v598_v15 = vrot.slane %v597_v11, 4  ;;  %v639_v16 = vadd.f32 %v638_v13, %v637_v7  ;;  %v668_v7 = vld [vmem:[%s3303_s6 + $0x60] sm:$0xff]  ;;  %v663_v13 = vld [vmem:[%s3303_s6 + $0x38] sm:$0xff]  ;;  %s2977_s21 = sshll.u32 %s1536_s26, 4  ;;  %s1507_s17 = scalar_lea.sflag [#allocation3], %s518_s28  ;;  %s1540_s21 = int_to_ptr.hbm [resolvable:$true] %s2977_s21 }
  0x27   : > { %731 = vperm.xlu2 %1978, %v685_v12   ;;  %v619_v17 = vadd.f32 %v618_v14, %v617_v10  ;;  %v690_v10 = vld [vmem:[%s3304_s7 + $0x50] sm:$0xff]  ;;  %v657_v12 = vld [vmem:[%s3303_s6 + $0x8] sm:$0xff] }
  0x28   : > { %v599_v18 = vadd.f32 %v598_v15, %v597_v11  ;;  %v640_v19 = vrot.slane %v639_v16, 2  ;;  %v689_v11 = vld [vmem:[%s3304_s7 + $0x48] sm:$0xff]  ;;  %v675_v15 = vld [vmem:[%s3303_s6 + $0x98] sm:$0xff] }
  0x29   : > { %v620_v20 = vrot.slane %v619_v17, 2  ;;  %v669_v14 = vld [vmem:[%s3303_s6 + $0x68] sm:$0xff] }
  0x2a   : > { %v600_v21 = vrot.slane %v599_v18, 2  ;;  %v641_v24 = vadd.f32 %v640_v19, %v639_v16  ;;  %v698_v16 = vld [vmem:[%s3304_s7 + $0x90] sm:$0xff] }
  0x2b   : > { %v621_v25 = vadd.f32 %v620_v20, %v619_v17  ;;  %v691_v17 = vld [vmem:[%s3304_s7 + $0x58] sm:$0xff]  ;;  %v658_v19 = vld [vmem:[%s3303_s6 + $0x10] sm:$0xff]  ;;  %v664_v20 = vld [vmem:[%s3303_s6 + $0x40] sm:$0xff] }
  0x2c   : > { %v601_v26 = vadd.f32 %v600_v21, %v599_v18  ;;  %v642_v27 = vrot.slane %v641_v24, 1  ;;  %v697_v18 = vld [vmem:[%s3304_s7 + $0x88] sm:$0xff]  ;;  %v670_v21 = vld [vmem:[%s3303_s6 + $0x70] sm:$0xff] }
  0x2d   : > { %771 = vperm.xlu1 %1977, %v693_v22   ;;  %766 = vperm.xlu0 %1976, %v692_v23   ;;  %v622_v29 = vrot.slane %v621_v25, 1  ;;  %v676_v22 = vld [vmem:[%s3303_s6 + $0xa0] sm:$0xff]  ;;  %v699_v23 = vld [vmem:[%s3304_s7 + $0x98] sm:$0xff] }
  0x2e   : > { %v602_v30 = vrot.slane %v601_v26, 1  ;;  %v643_v31 = vadd.f32 %v642_v27, %v641_v24  ;;  %v659_v24 = vld [vmem:[%s3303_s6 + $0x18] sm:$0xff]  ;;  %v677_v27 = vld [vmem:[%s3303_s6 + $0xa8] sm:$0xff] }
  0x2f   : > { %v623_v32 = vadd.f32 %v622_v29, %v621_v25  ;;  %736 = vperm.xlu2 %1978, %v686_v28   ;;  %v665_v25 = vld [vmem:[%s3303_s6 + $0x48] sm:$0xff]  ;;  %v660_v28 = vld [vmem:[%s3303_s6 + $0x20] sm:$0xff]  ;;  %v666_v29 = vld [vmem:[%s3303_s6 + $0x50] sm:$0xff] }
  0x30   : > { %v603_v33 = vadd.f32 %v602_v30, %v601_v26  ;;  %v644_v34 = vadd.f32 1e-06, %v643_v31  ;;  %v671_v26 = vld [vmem:[%s3303_s6 + $0x78] sm:$0xff]  ;;  %v672_v30 = vld [vmem:[%s3303_s6 + $0x80] sm:$0xff]  ;;  %v678_v31 = vld [vmem:[%s3303_s6 + $0xb0] sm:$0xff] }
  0x31   : > { %v624_v35 = vadd.f32 1e-06, %v623_v32  ;;  %v661_v32 = vld [vmem:[%s3303_s6 + $0x28] sm:$0xff] }
  0x32   : > { %v604_v36 = vadd.f32 1e-06, %v603_v33  ;;  %1979 = vrsqrt.f32 %v644_v34  ;;  %vm651_vm0 = vweird.f32 %v644_v34  ;;  %v667_v33 = vld [vmem:[%s3303_s6 + $0x58] sm:$0xff] }
  0x33   : > { %1981 = vrsqrt.f32 %v624_v35  ;;  %vm631_vm2 = vweird.f32 %v624_v35 }
  0x34   : > { %1983 = vrsqrt.f32 %v604_v36  ;;  %vm611_vm4 = vweird.f32 %v604_v36 }
  0x35   : > { %806 = vperm.xlu1 %1977, %v700_v37   ;;  %776 = vperm.xlu0 %1976, %v694_v38  }
  0x37   : > { %811 = vperm.xlu2 %1978, %v701_v39  }
  0x38   : > { %v1980_v40 = vpop.eup %1979 }
  0x39   : > { %v1982_v41 = vpop.eup %1981  ;;  %v646_v42 = vmul.f32 %v1980_v40, %v644_v34  ;;  %vm652_vm1 = vweird.f32 %v1980_v40  ;;  %v673_v34 = vld [vmem:[%s3303_s6 + $0x88] sm:$0xff] }
  0x3a   : > { %v1984_v43 = vpop.eup %1983  ;;  %v626_v46 = vmul.f32 %v1982_v41, %v624_v35  ;;  %vm632_vm3 = vweird.f32 %v1982_v41  ;;  %vm653_vm6 = vmor %vm651_vm0, %vm652_vm1  ;;  %v679_v35 = vld [vmem:[%s3303_s6 + $0xb8] sm:$0xff] }
  0x3b   : > { %v647_v47 = vmul.f32 %v1980_v40, %v646_v42  ;;  %v606_v48 = vmul.f32 %v1984_v43, %v604_v36  ;;  %vm612_vm5 = vweird.f32 %v1984_v43  ;;  %vm633_vm7 = vmor %vm631_vm2, %vm632_vm3 }
  0x3c   : > { %v627_v49 = vmul.f32 %v1982_v41, %v626_v46  ;;  %vm613_vm8 = vmor %vm611_vm4, %vm612_vm5 }
  0x3d   : > { %781 = vperm.xlu1 %1977, %v695_v44   ;;  %741 = vperm.xlu0 %1976, %v687_v45   ;;  %v648_v51 = vmul.f32 0.5, %v647_v47  ;;  %v607_v52 = vmul.f32 %v1984_v43, %v606_v48 }
  0x3e   : > { %v628_v53 = vmul.f32 0.5, %v627_v49 }
  0x3f   : > { %v649_v54 = vsub.f32 1.5, %v648_v51  ;;  %v608_v55 = vmul.f32 0.5, %v607_v52  ;;  %816 = vperm.xlu2 %1978, %v702_v50  }
  0x40   : > { %v629_v56 = vsub.f32 1.5, %v628_v53 }
  0x41   : > { %v650_v57 = vmul.f32 %v1980_v40, %v649_v54  ;;  %v609_v58 = vsub.f32 1.5, %v608_v55 }
  0x42   : > { %v630_v61 = vmul.f32 %v1982_v41, %v629_v56 }
  0x43   : > { %v654_v62 = vsel %vm653_vm6, %v1980_v40, %v650_v57  ;;  %v610_v63 = vmul.f32 %v1984_v43, %v609_v58 }
  0x44   : > { %v655_v0 = vmul.f32 %v654_v62, %v2438_v5  ;;  %v634_v1 = vsel %vm633_vm7, %v1982_v41, %v630_v61  ;;  %v656_v5 = vld [vmem:[%s3303_s6] sm:$0xff] }
  0x45   : > { %746 = vperm.xlu1 %1977, %v688_v59   ;;  %821 = vperm.xlu0 %1976, %v703_v60   ;;  %v635_v2 = vmul.f32 %v634_v1, %v2453_v8  ;;  %v614_v3 = vsel %vm613_vm8, %v1984_v43, %v610_v63  ;;  %v674_v8 = vld [vmem:[%s3303_s6 + $0x90] sm:$0xff] }
  0x46   : > { %910 = vmatpush.msra.mxu0 %v655_v0  ;;  %1899 = vmatpush.msra.mxu1 %v655_v0  ;;  %v615_v4 = vmul.f32 %v614_v3, %v2455_v9  ;;  %v696_v9 = vld [vmem:[%s3304_s7 + $0x80] sm:$0xff] }
  0x47   : > { %1900 = vmatpush.msra.mxu2 %v655_v0  ;;  %1901 = vmatpush.msra.mxu3 %v655_v0 }
  0x48   : > { %911 = vmatpush.msra.mxu0 %v635_v2  ;;  %1902 = vmatpush.msra.mxu1 %v635_v2 }
  0x49   : > { %1903 = vmatpush.msra.mxu2 %v635_v2  ;;  %1904 = vmatpush.msra.mxu3 %v635_v2 }
  0x4a   : > { %912 = vmatpush.msra.mxu0 %v615_v4  ;;  %1905 = vmatpush.msra.mxu1 %v615_v4 }
  0x4b   : > { %1906 = vmatpush.msra.mxu2 %v615_v4  ;;  %1907 = vmatpush.msra.mxu3 %v615_v4 }
  0x4c   : > { %1854 = vmatmul.msk.f32.vlgmr.msra.gmra.mxu0 %vm824_vm9, %v656_v5  ;;  %1860 = vmatmul.msk.f32.vlgmr.msra.gmra.mxu1 %vm824_vm9, %v662_v6 }
  0x4d   : > { %1866 = vmatmul.msk.f32.vlgmr.msra.gmra.mxu2 %vm824_vm9, %v668_v7  ;;  %1872 = vmatmul.msk.f32.vlgmr.msra.gmra.mxu3 %vm824_vm9, %v674_v8 }
  0x4e   : > { %786 = vperm.xlu1 %1977, %v696_v9   ;;  %756 = vperm.xlu0 %1976, %v690_v10  }
  0x4f   : > { %751 = vperm.xlu2 %1978, %v689_v11  }
  0x54   : > { %1855 = vmatmul.msk.f32.gmra.mxu0 %vm824_vm9, %v657_v12  ;;  %1861 = vmatmul.msk.f32.gmra.mxu1 %vm824_vm9, %v663_v13  ;;  %v1024_v12 = vld [vmem:[%s2642_s16 + $0x10] sm:$0xff] }
  0x55   : > { %1867 = vmatmul.msk.f32.gmra.mxu2 %vm824_vm9, %v669_v14  ;;  %1873 = vmatmul.msk.f32.gmra.mxu3 %vm824_vm9, %v675_v15 }
  0x56   : > { %796 = vperm.xlu1 %1977, %v698_v16   ;;  %761 = vperm.xlu0 %1976, %v691_v17  }
  0x57   : > { %791 = vperm.xlu2 %1978, %v697_v18  }
  0x5c   : > { %1856 = vmatmul.msk.f32.gmra.mxu0 %vm824_vm9, %v658_v19  ;;  %1862 = vmatmul.msk.f32.gmra.mxu1 %vm824_vm9, %v664_v20 }
  0x5d   : > { %1868 = vmatmul.msk.f32.gmra.mxu2 %vm824_vm9, %v670_v21  ;;  %1874 = vmatmul.msk.f32.gmra.mxu3 %vm824_vm9, %v676_v22 }
  0x5f   : > { %801 = vperm.xlu2 %1978, %v699_v23  }
  0x64   : > { %1857 = vmatmul.msk.f32.gmra.mxu0 %vm824_vm9, %v659_v24  ;;  %1863 = vmatmul.msk.f32.gmra.mxu1 %vm824_vm9, %v665_v25 }
  0x65   : > { %1869 = vmatmul.msk.f32.gmra.mxu2 %vm824_vm9, %v671_v26  ;;  %1875 = vmatmul.msk.f32.gmra.mxu3 %vm824_vm9, %v677_v27 }
  0x6c   : > { %1858 = vmatmul.msk.f32.gmra.mxu0 %vm824_vm9, %v660_v28  ;;  %1864 = vmatmul.msk.f32.gmra.mxu1 %vm824_vm9, %v666_v29 }
  0x6d   : > { %1870 = vmatmul.msk.f32.gmra.mxu2 %vm824_vm9, %v672_v30  ;;  %1876 = vmatmul.msk.f32.gmra.mxu3 %vm824_vm9, %v678_v31 }
  0x74   : > { %1859 = vmatmul.msk.f32.gmra.mxu0 %vm824_vm9, %v661_v32  ;;  %1865 = vmatmul.msk.f32.gmra.mxu1 %vm824_vm9, %v667_v33 }
  0x75   : > { %1871 = vmatmul.msk.f32.gmra.mxu2 %vm824_vm9, %v673_v34  ;;  %1877 = vmatmul.msk.f32.gmra.mxu3 %vm824_vm9, %v679_v35 }
  0x79   : > { %v2617_v38 = vpop.permute.xlu2 %726 }
  0x81   : > { %v2621_v41 = vpop.permute.xlu2 %731 }
  0x89   : > { %v737_v44 = vpop.permute.xlu2 %736 }
  0x8f   : > { %v717_v36 = vpop.permute.xlu1 %716  ;;  %v707_v37 = vpop.permute.xlu0 %706 }
  0x91   : > { %v2623_v47 = vpop.permute.xlu2 %811 }
  0x97   : > { %v2619_v39 = vpop.permute.xlu1 %721  ;;  %v712_v40 = vpop.permute.xlu0 %711 }
  0x99   : > { %v2631_v60 = vpop.permute.xlu2 %816 }
  0x9f   : > { %v772_v42 = vpop.permute.xlu1 %771  ;;  %v767_v43 = vpop.permute.xlu0 %766 }
  0xa7   : > { %v807_v45 = vpop.permute.xlu1 %806  ;;  %v777_v46 = vpop.permute.xlu0 %776 }
  0xa9   : > { %v752_v11 = vpop.permute.xlu2 %751 }
  0xaf   : > { %v2625_v51 = vpop.permute.xlu1 %781  ;;  %v742_v52 = vpop.permute.xlu0 %741 }
  0xb7   : > { %v747_v6 = vpop.permute.xlu1 %746  ;;  %v2658_v29 = vpop.permute.xlu0 %821 }
  0xc0   : > { %v787_v33 = vpop.permute.xlu1 %786 }
  0xc9   : > { %v914_v48 = vpop.f32.mrf.mxu0  ;;  %v932_v49 = vpop.f32.mrf.mxu1 }
  0xca   : > { %v933_v50 = vadd.f32 %v932_v49, %v737_v44  ;;  %v915_v0 = vadd.f32 %v914_v48, %v707_v37 }
  0xcc   : > { %1985 = vtanh.f32 %v933_v50 }
  0xd0   : > { %v950_v53 = vpop.f32.mrf.mxu2  ;;  %v2627_v54 = vpop.f32.mrf.mxu3 }
  0xd1   : > { %v917_v55 = vpop.f32.mrf.mxu0  ;;  %v935_v56 = vpop.f32.mrf.mxu1  ;;  %v951_v61 = vadd.f32 %v950_v53, %v767_v43  ;;  %v1111_v53 = vld [vmem:[%s2695_s19 + $0x8] sm:$0xff] }
  0xd2   : > { %v2629_v57 = vadd.f32 %v917_v55, %v712_v40  ;;  %v936_v58 = vadd.f32 %v935_v56, %v742_v52  ;;  %v1986_v59 = vpop.eup %1985  ;;  %v2682_v40 = vpop.permute.xlu2 %791 }
  0xd3   : > { %v1012_v62 = vmul.f32 0.5, %v1986_v59 }
  0xd4   : > { %1987 = vtanh.f32 %v936_v58 }
  0xd5   : > { %v1018_v63 = vmul.f32 1.442695, %v1012_v62  ;;  %1989 = vtanh.f32 %v951_v61 }
  0xd7   : > { %1991 = vpow2.f32 %v1018_v63 }
  0xd8   : > { %v953_v1 = vpop.f32.mrf.mxu2  ;;  %v2636_v2 = vpop.f32.mrf.mxu3 }
  0xd9   : > { %v954_v3 = vadd.f32 %v953_v1, %v772_v42  ;;  %v920_v4 = vpop.f32.mrf.mxu0  ;;  %v938_v5 = vpop.f32.mrf.mxu1 }
  0xda   : > { %v921_v7 = vadd.f32 %v920_v4, %v717_v36  ;;  %v939_v8 = vadd.f32 %v938_v5, %v747_v6  ;;  %v1988_v9 = vpop.eup %1987  ;;  %v797_v6 = vpop.permute.xlu1 %796 }
  0xdb   : > { %1993 = vtanh.f32 %v954_v3  ;;  %v1990_v10 = vpop.eup %1989  ;;  %v1013_v13 = vmul.f32 0.5, %v1988_v9 }
  0xdc   : > { %1995 = vtanh.f32 %v915_v0  ;;  %v1098_v20 = vmul.f32 0.5, %v1990_v10  ;;  %v969_v10 = vadd.f32 %v2627_v54, %v797_v6 }
  0xdd   : > { %1997 = vtanh.f32 %v921_v7  ;;  %v2646_v14 = vpop.eup %1991  ;;  %v1020_v15 = vmul.f32 1.442695, %v1013_v13 }
  0xde   : > { %1999 = vtanh.f32 %v939_v8  ;;  %v1028_v16 = vmul.f32 %v2646_v14, %v1024_v12  ;;  %v1102_v35 = vmul.f32 1.442695, %v1098_v20  ;;  %v1040_v9 = vmul.f32 %v2646_v14, %v2646_v14  ;;  %v1112_v20 = vld [vmem:[%s2695_s19 + $0x10] sm:$0xff] }
  0xdf   : > { %2001 = vpow2.f32 %v1020_v15 }
  0xe0   : > { %v956_v17 = vpop.f32.mrf.mxu2  ;;  %v974_v18 = vpop.f32.mrf.mxu3 }
  0xe1   : > { %v1994_v19 = vpop.eup %1993  ;;  %v957_v21 = vadd.f32 %v956_v17, %v777_v46  ;;  %v975_v22 = vadd.f32 %v974_v18, %v807_v45  ;;  %v923_v23 = vpop.f32.mrf.mxu0  ;;  %v1025_v46 = vld [vmem:[%s2642_s16 + $0x18] sm:$0xff] }
  0xe2   : > { %v2653_v24 = vpop.eup %1995  ;;  %v1099_v25 = vmul.f32 0.5, %v1994_v19  ;;  %v941_v26 = vpop.f32.mrf.mxu1  ;;  %v924_v28 = vadd.f32 %v923_v23, %v2619_v39  ;;  %v2749_v23 = vmul.f32 %v1040_v9, %v1040_v9 }
  0xe3   : > { %v2655_v27 = vpop.eup %1997  ;;  %2003 = vtanh.f32 %v957_v21  ;;  %v2667_v34 = vmul.f32 %v2653_v24, %v2653_v24  ;;  %v942_v39 = vadd.f32 %v941_v26, %v752_v11  ;;  %v802_v17 = vpop.permute.xlu2 %801 }
  0xe4   : > { %v1104_v30 = vmul.f32 1.442695, %v1099_v25  ;;  %v2661_v31 = vadd.f32 %v2655_v27, %v1028_v16  ;;  %v2663_v32 = vpop.eup %1999  ;;  %2005 = vtanh.f32 %v975_v22  ;;  %v972_v19 = vadd.f32 %v2636_v2, %v802_v17 }
  0xe5   : > { %v2671_v36 = vmul.f32 %v2663_v32, %v2663_v32  ;;  %v2675_v37 = vadd.f32 %v2663_v32, %v2653_v24  ;;  %v2689_v45 = vpop.eup %2001 }
  0xe6   : > { %2007 = vpow2.f32 %v1104_v30  ;;  %1036 = vst [vmem:[%s2678_s23 + $0x10] sm:$0xff] %v2661_v31  ;;  %v1029_v59 = vmul.f32 %v2689_v45, %v1025_v46  ;;  %v1058_v1 = vmul.f32 1.442695, %v2661_v31 }
  0xe7   : > { %2009 = vtanh.f32 %v924_v28  ;;  %v2687_v42 = vadd.f32 %v2671_v36, %v2667_v34 }
  0xe8   : > { %2011 = vtanh.f32 %v2629_v57  ;;  %v959_v43 = vpop.f32.mrf.mxu2  ;;  %v977_v44 = vpop.f32.mrf.mxu3 }
  0xe9   : > { %2013 = vpow2.f32 %v1102_v35  ;;  %v960_v48 = vadd.f32 %v959_v43, %v2625_v51  ;;  %v978_v49 = vadd.f32 %v977_v44, %v2623_v47  ;;  %v926_v50 = vpop.f32.mrf.mxu0  ;;  %v2004_v52 = vpop.eup %2003  ;;  %v1198_v43 = vld [vmem:[%s2743_s29] sm:$0xff] }
  0xea   : > { %2015 = vtanh.f32 %v942_v39  ;;  %v927_v55 = vadd.f32 %v926_v50, %v2617_v38  ;;  %v2006_v56 = vpop.eup %2005  ;;  %v1100_v57 = vmul.f32 0.5, %v2004_v52  ;;  %v944_v62 = vpop.f32.mrf.mxu1  ;;  %v2762_v50 = vmul.f32 %v2655_v27, %v2655_v27 }
  0xeb   : > { %2017 = vtanh.f32 %v960_v48  ;;  %v1186_v61 = vmul.f32 0.5, %v2006_v56  ;;  %v757_v38 = vpop.permute.xlu0 %756 }
  0xec   : > { %v2702_v58 = vpop.eup %2007  ;;  %v1106_v47 = vmul.f32 1.442695, %v1100_v57  ;;  %2019 = vtanh.f32 %v978_v49  ;;  %v945_v7 = vadd.f32 %v944_v62, %v757_v38 }
  0xed   : > { %v2705_v63 = vpop.eup %2009  ;;  %v2708_v51 = vmul.f32 %v2702_v58, %v1111_v53  ;;  %v1190_v3 = vmul.f32 1.442695, %v1186_v61  ;;  %2021 = vtanh.f32 %v927_v55  ;;  %v1041_v55 = vmul.f32 %v2689_v45, %v2689_v45 }
  0xee   : > { %v2710_v0 = vpop.eup %2011  ;;  %v2714_v4 = vadd.f32 %v2705_v63, %v1029_v59  ;;  %2023 = vpow2.f32 %v1106_v47 }
  0xef   : > { %3328 = vst [vmem:[#allocation15_spill] sm:$0xff] %v2708_v51  ;;  %v2716_v5 = vpop.eup %2013  ;;  %2025 = vpow2.f32 %v1190_v3  ;;  %v2727_v13 = vmul.f32 %v2710_v0, %v2710_v0 }
  0xf0   : > { %3329 = vst [vmem:[#allocation16_spill] sm:$0xff] %v2714_v4  ;;  %v2718_v8 = vpop.eup %2015  ;;  %v962_v11 = vpop.f32.mrf.mxu2  ;;  %2027 = vpow2.f32 %v1058_v1  ;;  %v1126_v25 = vmul.f32 %v2716_v5, %v2716_v5 }
  0xf1   : > { %1037 = vst [vmem:[%s2678_s23 + $0x18] sm:$0xff] %v2714_v4  ;;  %v2018_v12 = vpop.eup %2017  ;;  %v2731_v15 = vmul.f32 %v2718_v8, %v2718_v8  ;;  %v2735_v16 = vadd.f32 %v2718_v8, %v2710_v0  ;;  %v963_v14 = vadd.f32 %v962_v11, %v787_v33  ;;  %2029 = vtanh.f32 %v945_v7  ;;  %v980_v2 = vpop.f32.mrf.mxu3 }
  0xf2   : > { %v1101_v54 = vmul.f32 0.5, %v2018_v12  ;;  %v2020_v18 = vpop.eup %2019  ;;  %v981_v46 = vadd.f32 %v980_v2, %v2631_v60  ;;  %v2758_v49 = vmul.f32 %v1126_v25, %v1126_v25  ;;  %v1398_v7 = vmul.f32 3.0, %v2667_v34  ;;  %v1022_v12 = vld [vmem:[%s2642_s16] sm:$0xff] }
  0xf3   : > { %v2747_v21 = vadd.f32 %v2731_v15, %v2727_v13  ;;  %v2022_v22 = vpop.eup %2021  ;;  %2031 = vtanh.f32 %v963_v14  ;;  %v1187_v57 = vmul.f32 0.5, %v2020_v18 }
  0xf4   : > { %v1108_v26 = vmul.f32 1.442695, %v1101_v54  ;;  %v2024_v28 = vpop.eup %2023  ;;  %2033 = vtanh.f32 %v969_v10  ;;  %v1010_v30 = vmul.f32 0.5, %v2022_v22  ;;  %v2820_v22 = vmul.f32 %v1041_v55, %v1041_v55 }
  0xf5   : > { %v2026_v33 = vpop.eup %2025  ;;  %v1116_v35 = vmul.f32 %v2024_v28, %v1112_v20  ;;  %v1128_v39 = vmul.f32 %v2024_v28, %v2024_v28  ;;  %v1192_v25 = vmul.f32 1.442695, %v1187_v57 }
  0xf6   : > { %2035 = vpow2.f32 %v1108_v26  ;;  %v1014_v44 = vmul.f32 1.442695, %v1010_v30  ;;  %v2755_v48 = vpop.eup %2027  ;;  %v1202_v56 = vmul.f32 %v2026_v33, %v1198_v43  ;;  %v1214_v61 = vmul.f32 %v2026_v33, %v2026_v33  ;;  %3330 = vst [vmem:[#allocation17_spill] sm:$0xff] %v2820_v22 }
  0xf7   : > { %2037 = vtanh.f32 %v972_v19  ;;  %v2764_v52 = vmul.f32 %v1128_v39, %v1128_v39  ;;  %v2766_v53 = vpop.eup %2029  ;;  %v2807_v17 = vadd.f32 1.0, %v2755_v48  ;;  %v1426_v43 = vmul.f32 3.0, %v2671_v36 }
  0xf8   : > { %2039 = vrcp.f32 %v2749_v23  ;;  %v2775_v62 = vadd.f32 %v2766_v53, %v1116_v35  ;;  %v2779_v47 = vmul.f32 %v2766_v53, %v2766_v53  ;;  %v2816_v18 = vmul.f32 %v1214_v61, %v1214_v61 }
  0xf9   : > { %2041 = vpow2.f32 %v1014_v44  ;;  %v2032_v60 = vpop.eup %2031  ;;  %v2772_v59 = vadd.f32 %v2764_v52, %v2749_v23 }
  0xfa   : > { %v2781_v38 = vpop.eup %2033  ;;  %v2783_v45 = vadd.f32 %v2032_v60, %v1202_v56  ;;  %v1362_v1 = vmul.f32 %v2032_v60, %v2032_v60  ;;  %v1386_v3 = vadd.f32 %v2032_v60, %v2675_v37  ;;  %2043 = vtanh.f32 %v981_v46  ;;  %1124 = vst [vmem:[%s2794_s30 + $0x10] sm:$0xff] %v2775_v62 }
  0xfb   : > { %2045 = vrcp.f32 %v2758_v49  ;;  %v1146_v9 = vmul.f32 1.442695, %v2775_v62  ;;  %v1376_v10 = vadd.f32 %v2779_v47, %v2762_v50  ;;  %v1127_v37 = vmul.f32 %v2702_v58, %v2702_v58 }
  0xfc   : > { %v2786_v6 = vpop.eup %2035  ;;  %v1378_v14 = vadd.f32 %v2687_v42, %v1362_v1  ;;  %1210 = vst [vmem:[%s2810_s13] sm:$0xff] %v2783_v45  ;;  %v1390_v58 = vmul.f32 2.0, %v1386_v3  ;;  %v1364_v19 = vmul.f32 %v2781_v38, %v2781_v38  ;;  %v1458_v26 = vmul.f32 3.0, %v1362_v1 }
  0xfd   : > { %v2798_v11 = vpop.eup %2037  ;;  %v1129_v34 = vmul.f32 %v2786_v6, %v2786_v6  ;;  %2047 = vpow2.f32 %v1146_v9  ;;  %v2825_v39 = vmul.f32 %v1127_v37, %v1127_v37 }
  0xfe   : > { %v2814_v54 = vpop.eup %2039  ;;  %v1402_v30 = vadd.f32 %v1398_v7, %v1378_v14  ;;  %v1406_v33 = vmul.f32 %v2653_v24, %v1390_v58  ;;  %2049 = vrcp.f32 %v2807_v17  ;;  %v1430_v61 = vadd.f32 %v1426_v43, %v1378_v14 }
  0xff   : > { %v2042_v20 = vpop.eup %2041  ;;  %v2822_v42 = vmul.f32 %v1129_v34, %v1129_v34  ;;  %2051 = vrcp.f32 %v2816_v18  ;;  %v1434_v1 = vmul.f32 %v2663_v32, %v1390_v58  ;;  %v1462_v3 = vadd.f32 %v1458_v26, %v1378_v14  ;;  %v929_v26 = vpop.f32.mrf.mxu0 }
 0x100   : > { %v1026_v2 = vmul.f32 %v2042_v20, %v1022_v12  ;;  %v1038_v28 = vmul.f32 %v2042_v20, %v2042_v20  ;;  %v2044_v35 = vpop.eup %2043  ;;  %v1410_v57 = vsub.f32 %v1402_v30, %v1406_v33  ;;  %2053 = vpow2.f32 %v1192_v25 }
 0x101   : > { %v2830_v44 = vadd.f32 %v2822_v42, %v2820_v22  ;;  %v2046_v46 = vpop.eup %2045  ;;  %v1466_v9 = vmul.f32 %v2032_v60, %v1390_v58  ;;  %v1188_v37 = vmul.f32 0.5, %v2044_v35  ;;  %v1438_v34 = vsub.f32 %v1430_v61, %v1434_v1  ;;  %v762_v35 = vpop.permute.xlu0 %761 }
 0x102   : > { %v2835_v55 = vadd.f32 %v2653_v24, %v1026_v2  ;;  %v1042_v56 = vmul.f32 %v1038_v28, %v1038_v28  ;;  %v1060_v24 = vmul.f32 1.442695, %v2714_v4  ;;  %v1460_v25 = vmul.f32 3.0, %v1364_v19  ;;  %v947_v2 = vpop.f32.mrf.mxu1 }
 0x103   : > { %3331 = vst [vmem:[#allocation18_spill] sm:$0xff] %v2830_v44  ;;  %v2048_v36 = vpop.eup %2047  ;;  %v1470_v14 = vsub.f32 %v1462_v3, %v1466_v9  ;;  %v1138_v30 = vmul.f32 0.5, %v2046_v46  ;;  %v1380_v60 = vadd.f32 %v1376_v10, %v1364_v19  ;;  %v1400_v58 = vmul.f32 3.0, %v2762_v50 }
 0x104   : > { %1034 = vst [vmem:[%s2678_s23] sm:$0xff] %v2835_v55  ;;  %2055 = vrcp.f32 %v1042_v56  ;;  %v1366_v7 = vadd.f32 %v2758_v49, %v1042_v56  ;;  %v2843_v12 = vadd.f32 1.0, %v2048_v36  ;;  %v2050_v28 = vpop.eup %2049  ;;  %v1194_v4 = vmul.f32 1.442695, %v1188_v37 }
 0x105   : > { %2057 = vrcp.f32 %v2820_v22  ;;  %v2052_v33 = vpop.eup %2051  ;;  %v1384_v3 = vadd.f32 %v2766_v53, %v2655_v27  ;;  %v930_v46 = vadd.f32 %v929_v26, %v2621_v41  ;;  %v948_v9 = vadd.f32 %v947_v2, %v762_v35 }
 0x106   : > { %2059 = vrcp.f32 %v2825_v39  ;;  %v1370_v20 = vadd.f32 %v1366_v7, %v2816_v18  ;;  %v2851_v7 = vpop.eup %2053  ;;  %v1230_v50 = vmul.f32 1.442695, %v2783_v45  ;;  %v2865_v41 = vadd.f32 %v1400_v58, %v1380_v60 }
 0x107   : > { %2061 = vrcp.f32 %v2843_v12  ;;  %v1428_v26 = vmul.f32 3.0, %v2779_v47 }
 0x108   : > { %v1394_v43 = vsub.f32 %v1370_v20, %v1042_v56  ;;  %v1422_v61 = vsub.f32 %v1370_v20, %v2758_v49  ;;  %v1454_v1 = vsub.f32 %v1370_v20, %v2816_v18  ;;  %2063 = vpow2.f32 %v1060_v24 }
 0x109   : > { %v2858_v56 = vmul.f32 %v2050_v28, %v2755_v48  ;;  %v1226_v18 = vmul.f32 0.5, %v2052_v33  ;;  %v1388_v24 = vadd.f32 %v2781_v38, %v1384_v3  ;;  %2065 = vpow2.f32 %v1194_v4 }
 0x10a   : > { %v2056_v10 = vpop.eup %2055  ;;  %v1414_v19 = vadd.f32 %v1410_v57, %v1394_v43  ;;  %v1442_v22 = vadd.f32 %v1438_v34, %v1422_v61  ;;  %v1474_v20 = vadd.f32 %v1470_v14, %v1454_v1  ;;  %v1215_v48 = vmul.f32 %v2851_v7, %v2851_v7  ;;  %v965_v14 = vpop.f32.mrf.mxu2  ;;  %v1200_v43 = vld [vmem:[%s2743_s29 + $0x10] sm:$0xff]  ;;  %v1110_v61 = vld [vmem:[%s2695_s19] sm:$0xff] }
 0x10b   : > { %v2860_v49 = vpop.eup %2057  ;;  %v1050_v37 = vmul.f32 0.5, %v2056_v10  ;;  %v1392_v28 = vmul.f32 2.0, %v1388_v24  ;;  %v2872_v35 = vadd.f32 %v1428_v26, %v1380_v60  ;;  %2067 = vtanh.f32 %v930_v46  ;;  %v1113_v10 = vld [vmem:[%s2695_s19 + $0x18] sm:$0xff]  ;;  %s2167_s19 = sshra.s32 %s1540_s21, 4  ;;  %s2168_s19 = int_to_ptr.hbm [resolvable:$true] %s2167_s19 }
 0x10c   : > { %v2863_v44 = vpop.eup %2059  ;;  %v1446_v51 = vmul.f32 %v1442_v22, %v1138_v30  ;;  %v1478_v2 = vmul.f32 %v1474_v20, %v1226_v18  ;;  %v2874_v22 = vadd.f32 %v1460_v25, %v1380_v60  ;;  %2069 = vrcp.f32 %v2764_v52  ;;  %p2174_p1 = scmp.lt.s32.totalorder %s2168_s19, %s3305_s8 }
 0x10d   : > { %v2062_v57 = vpop.eup %2061  ;;  %v1418_v34 = vmul.f32 %v1414_v19, %v1050_v37  ;;  %v1408_v30 = vmul.f32 %v2655_v27, %v1392_v28  ;;  %v1436_v58 = vmul.f32 %v2766_v53, %v1392_v28  ;;  %2071 = vlog2.f32 %v2807_v17 }
 0x10e   : > { %v2870_v33 = vmul.f32 %v2062_v57, %v2048_v36  ;;  %v2876_v4 = vpop.eup %2063  ;;  %v1468_v25 = vmul.f32 %v2781_v38, %v1392_v28  ;;  %v966_v60 = vadd.f32 %v965_v14, %v2682_v40  ;;  %v2890_v1 = vmul.f32 %v1215_v48, %v1215_v48 }
 0x10f   : > { %v1450_v47 = vadd.f32 %v1446_v51, %v1418_v34  ;;  %v1412_v27 = vsub.f32 %v2865_v41, %v1408_v30  ;;  %v1440_v53 = vsub.f32 %v2872_v35, %v1436_v58  ;;  %v2066_v3 = vpop.eup %2065  ;;  %v1054_v17 = vmul.f32 1.442695, %v2835_v55 }
 0x110   : > { %v2885_v36 = vadd.f32 %v2870_v33, %v2858_v56  ;;  %2073 = vpow2.f32 %v1230_v50  ;;  %v1472_v46 = vsub.f32 %v2874_v22, %v1468_v25  ;;  %v1204_v19 = vmul.f32 %v2066_v3, %v1200_v43 }
 0x111   : > { %v2892_v51 = vadd.f32 %v1478_v2, %v1450_v47  ;;  %2075 = vtanh.f32 %v948_v9  ;;  %v2068_v40 = vpop.eup %2067  ;;  %v1114_v18 = vmul.f32 %v2716_v5, %v1110_v61  ;;  %v1216_v37 = vmul.f32 %v2066_v3, %v2066_v3  ;;  %v983_v2 = vpop.f32.mrf.mxu3 }
 0x112   : > { %2077 = vtanh.f32 %v966_v60  ;;  %v2070_v20 = vpop.eup %2069  ;;  %v2902_v24 = vadd.f32 %v2781_v38, %v1204_v19  ;;  %v2905_v50 = vmul.f32 3.0, %v2727_v13  ;;  %v1117_v26 = vmul.f32 %v2786_v6, %v1113_v10  ;;  %v1199_v13 = vld [vmem:[%s2743_s29 + $0x8] sm:$0xff] }
 0x113   : > { %2079 = vrcp.f32 %v2890_v1  ;;  %v2072_v41 = vpop.eup %2071  ;;  %v1220_v9 = vmul.f32 %v1216_v37, %v1216_v37  ;;  %v1052_v57 = vmul.f32 0.5, %v2814_v54  ;;  %v1011_v48 = vmul.f32 0.5, %v2068_v40 }
 0x114   : > { %2081 = vpow2.f32 %v1054_v17  ;;  %1212 = vst [vmem:[%s2810_s13 + $0x10] sm:$0xff] %v2902_v24  ;;  %v1234_v5 = vmul.f32 1.442695, %v2902_v24  ;;  %v2917_v38 = vmul.f32 %v2705_v63, %v2705_v63  ;;  %v2922_v54 = vadd.f32 %v2663_v32, %v1114_v18 }
 0x115   : > { %2083 = vlog2.f32 %v2843_v12  ;;  %v1372_v6 = vadd.f32 %v2772_v59, %v1220_v9  ;;  %v1427_v28 = vmul.f32 3.0, %v2731_v15  ;;  %v2927_v14 = vmul.f32 0.6931472, %v2072_v41 }
 0x116   : > { %v2913_v34 = vpop.eup %2073  ;;  %2085 = vrcp.f32 %v1220_v9  ;;  %v1016_v35 = vmul.f32 1.442695, %v1011_v48  ;;  %1122 = vst [vmem:[%s2794_s30] sm:$0xff] %v2922_v54  ;;  %v1140_v43 = vmul.f32 0.5, %v2070_v20  ;;  %v1203_v15 = vmul.f32 %v2851_v7, %v1199_v13 }
 0x117   : > { %v2924_v12 = vpop.eup %2075  ;;  %2087 = vpow2.f32 %v1234_v5  ;;  %v1396_v47 = vsub.f32 %v1372_v6, %v2749_v23  ;;  %v1424_v30 = vsub.f32 %v1372_v6, %v2764_v52  ;;  %v1456_v59 = vsub.f32 %v1372_v6, %v1220_v9 }
 0x118   : > { %v2078_v22 = vpop.eup %2077  ;;  %v2932_v58 = vadd.f32 %v2924_v12, %v1117_v26  ;;  %2089 = vpow2.f32 %v1016_v35  ;;  %v984_v25 = vadd.f32 %v983_v2, %v2658_v29  ;;  %v1084_v7 = vsub.f32 %v2661_v31, %v2927_v14  ;;  %v1023_v31 = vld [vmem:[%s2642_s16 + $0x8] sm:$0xff]  ;;  %s1537_s16 = sshll.u32 %s2678_s23, 4  ;;  %s2997_s16 = int_to_ptr.vmem [resolvable:$true] %s1537_s16 }
 0x119   : > { %v2936_v32 = vpop.eup %2079  ;;  %v1416_v52 = vadd.f32 %v1412_v27, %v1396_v47  ;;  %v1444_v60 = vadd.f32 %v1440_v53, %v1424_v30  ;;  %v1476_v61 = vadd.f32 %v1472_v46, %v1456_v59  ;;  %v2950_v10 = vadd.f32 %v2078_v22, %v1203_v15 }
 0x11a   : > { %v2943_v23 = vpop.eup %2081  ;;  %v1148_v3 = vmul.f32 1.442695, %v2932_v58  ;;  %1125 = vst [vmem:[%s2794_s30 + $0x18] sm:$0xff] %v2932_v58  ;;  %v1363_v29 = vmul.f32 %v2078_v22, %v2078_v22  ;;  %v1387_v19 = vadd.f32 %v2078_v22, %v2735_v16  ;;  %v1092_v27 = vsub.f32 0.0, %v2927_v14 }
 0x11b   : > { %v2084_v17 = vpop.eup %2083  ;;  %v1420_v53 = vmul.f32 %v1416_v52, %v1052_v57  ;;  %v1448_v46 = vmul.f32 %v1444_v60, %v1140_v43  ;;  %1211 = vst [vmem:[%s2810_s13 + $0x8] sm:$0xff] %v2950_v10  ;;  %v2965_v16 = vadd.f32 1.0, %v2876_v4  ;;  %v3001_v60 = vmul.f32 0.5, %v2863_v44 }
 0x11c   : > { %v2086_v40 = vpop.eup %2085  ;;  %2091 = vpow2.f32 %v1148_v3  ;;  %v1379_v20 = vadd.f32 %v2747_v21, %v1363_v29  ;;  %v1391_v41 = vmul.f32 2.0, %v1387_v19  ;;  %v2967_v26 = vmul.f32 0.6931472, %v2084_v17 }
 0x11d   : > { %v2958_v18 = vpop.eup %2087  ;;  %v1228_v37 = vmul.f32 0.5, %v2086_v40  ;;  %v1452_v57 = vadd.f32 %v1448_v46, %v1420_v53  ;;  %v1459_v5 = vmul.f32 3.0, %v1363_v29  ;;  %2093 = vtanh.f32 %v984_v25 }
 0x11e   : > { %v1240_v9 = vadd.f32 1.0, %v2958_v18  ;;  %v2090_v48 = vpop.eup %2089  ;;  %v2971_v6 = vadd.f32 %v2905_v50, %v1379_v20  ;;  %v2974_v2 = vmul.f32 %v2710_v0, %v1391_v41  ;;  %v2979_v47 = vadd.f32 %v1427_v28, %v1379_v20 }
 0x11f   : > { %v1480_v13 = vmul.f32 %v1476_v61, %v1228_v37  ;;  %v1027_v21 = vmul.f32 %v2090_v48, %v1023_v31  ;;  %v1039_v35 = vmul.f32 %v2090_v48, %v2090_v48  ;;  %v2986_v59 = vmul.f32 %v2718_v8, %v1391_v41 }
 0x120   : > { %2095 = vrcp.f32 %v1240_v9  ;;  %v1411_v50 = vsub.f32 %v2971_v6, %v2974_v2  ;;  %v2993_v52 = vadd.f32 %v1459_v5, %v1379_v20  ;;  %v2995_v28 = vmul.f32 %v2078_v22, %v1391_v41 }
 0x121   : > { %2097 = vlog2.f32 %v1240_v9  ;;  %v2981_v30 = vadd.f32 %v1480_v13, %v1452_v57  ;;  %v2991_v15 = vadd.f32 %v2710_v0, %v1027_v21  ;;  %v1043_v25 = vmul.f32 %v1039_v35, %v1039_v35 }
 0x122   : > { %v2988_v43 = vpop.eup %2091  ;;  %v1439_v61 = vsub.f32 %v2979_v47, %v2986_v59  ;;  %v3008_v0 = vmul.f32 %v2798_v11, %v2798_v11  ;;  %v3011_v22 = vadd.f32 1.0, %v2913_v34  ;;  %v1471_v44 = vsub.f32 %v2993_v52, %v2995_v28 }
 0x123   : > { %v1153_v3 = vadd.f32 1.0, %v2988_v43  ;;  %1035 = vst [vmem:[%s2678_s23 + $0x8] sm:$0xff] %v2991_v15  ;;  %2099 = vrcp.f32 %v1043_v25  ;;  %v1367_v17 = vadd.f32 %v2825_v39, %v1043_v25  ;;  %v2094_v29 = vpop.eup %2093  ;;  %v1088_v19 = vmax.f32 %v1084_v7, -100.0  ;;  %s2169_s23 = scalar_lea.hbm %s2168_s19, 32 }
 0x124   : > { %v1172_v40 = vsub.f32 %v2775_v62, %v2967_v26  ;;  %v1180_v53 = vsub.f32 0.0, %v2967_v26  ;;  %2101 = vrcp.f32 %v2965_v16  ;;  %p2170_p12 = scmp.ne.s32.totalorder %s2168_s19, %s2169_s23  ;;  %p2175_p2 = scmp.lt.s32.totalorder %s2173_s20, %s2169_s23 }
 0x126   : > { %p2171_p13 = pnand %p2170_p12, %p2398_p4  ;;  %p2176_p3 = por %p2175_p2, %p2174_p1 }
 0x128   : > { %p2172_p0 = pneg %p2171_p13 }
 0x12a   : > { %p2177_p5 = pnand %p2176_p3, %p2172_p0 }
 0x12c   : > { %2180 = shalt.err (!%p2177_p5)
}
 0x12d   : > { %s2294_s28 = smov 128   ;;  %s2295_s0 = smov 8   ;;  %v2096_v62 = vpop.eup %2095  ;;  %v1227_v7 = vmul.f32 0.5, %v2936_v32  ;;  %v1096_v46 = vmax.f32 %v1092_v27, -100.0  ;;  %v1371_v37 = vadd.f32 %v1367_v17, %v2890_v1  ;;  %2103 = vrcp.f32 %v1153_v3 }
 0x12e   : > { %1908 = dma.vmem_to_hbm [thread:$0]  (%p2398_p4), %s2997_s16, 512, %s1540_s21, %s1507_s17, %s2294_s28, %s2294_s28, %s2295_s0   ;;  %v2098_v31 = vpop.eup %2097  ;;  %v3047_v20 = vadd.f32 1.0, %v2943_v23  ;;  %v1248_v41 = vmul.f32 %v2096_v62, %v2958_v18  ;;  %v1232_v26 = vmul.f32 1.442695, %v2950_v10  ;;  %2105 = vlog2.f32 %v1153_v3 }
 0x12f   : > { %v1255_v9 = vmul.f32 0.6931472, %v2098_v31  ;;  %v1395_v57 = vsub.f32 %v1371_v37, %v1043_v25  ;;  %v1423_v5 = vsub.f32 %v1371_v37, %v2825_v39  ;;  %v1455_v32 = vsub.f32 %v1371_v37, %v2890_v1  ;;  %v2100_v6 = vpop.eup %2099  ;;  %s1554_s17 = scalar_lea.hbm %s3306_s9, %s2941_s14  ;;  %s3332_s19 = sadd.s32 4294967295, %s2291_s22  }
 0x130   : > { %v1176_v14 = vmax.f32 %v1172_v40, -100.0  ;;  %v1184_v27 = vmax.f32 %v1180_v53, -100.0  ;;  %v1280_v48 = vadd.f32 %v2885_v36, %v1248_v41  ;;  %v1361_v13 = vmul.f32 %v2924_v12, %v2924_v12  ;;  %v2102_v47 = vpop.eup %2101  ;;  %s3088_s23 = sand.u32 1, %s3332_s19   ;;  %s1555_s24 = sshll.u32 %s2794_s30, 4  ;;  %s3120_s24 = int_to_ptr.vmem [resolvable:$true] %s1555_s24 }
 0x131   : > { %v1260_v2 = vsub.f32 %v2902_v24, %v1255_v9  ;;  %v1056_v18 = vmul.f32 1.442695, %v2991_v15  ;;  %v1415_v21 = vadd.f32 %v1411_v50, %v1395_v57  ;;  %v1189_v35 = vmul.f32 0.5, %v2094_v29  ;;  %s3098_s25 = sshll.u32 %s1554_s17, 4  ;;  %s1572_s26 = scalar_lea.hbm %s3307_s10, %s2941_s14  ;;  %s1558_s25 = int_to_ptr.hbm [resolvable:$true] %s3098_s25 }
 0x132   : > { %v1284_v59 = vsub.f32 %v1280_v48, %v2858_v56  ;;  %v1288_v39 = vsub.f32 %v1280_v48, %v2870_v33  ;;  %v1292_v1 = vsub.f32 %v1280_v48, %v1248_v41  ;;  %v1051_v25 = vmul.f32 0.5, %v2100_v6  ;;  %s3131_s14 = sshll.u32 %s1572_s26, 4  ;;  %s1512_s16 = scalar_lea.sflag [#allocation5], %s3088_s23  ;;  %s1576_s14 = int_to_ptr.hbm [resolvable:$true] %s3131_s14 }
 0x133   : > { %v2104_v52 = vpop.eup %2103  ;;  %v1264_v28 = vmax.f32 %v1260_v2, -100.0  ;;  %2107 = vpow2.f32 %v1232_v26  ;;  %v1443_v36 = vadd.f32 %v1439_v61, %v1423_v5  ;;  %v1475_v3 = vadd.f32 %v1471_v44, %v1455_v32  ;;  %s2195_s21 = sshra.s32 %s1558_s25, 4  ;;  %s2201_s20 = scalar_lea.hbm %s3306_s9, 64  ;;  %s2196_s21 = int_to_ptr.hbm [resolvable:$true] %s2195_s21 }
 0x134   : > { %v2106_v17 = vpop.eup %2105  ;;  %v1296_v40 = vmul.f32 %v1284_v59, %v1088_v19  ;;  %v1300_v53 = vsub.f32 2.0, %v1284_v59  ;;  %v1312_v24 = vmul.f32 %v1288_v39, %v1176_v14  ;;  %v1320_v62 = vsub.f32 2.0, %v1288_v39  ;;  %v1201_v59 = vld [vmem:[%s2743_s29 + $0x18] sm:$0xff]  ;;  %s1573_s29 = sshll.u32 %s2810_s13, 4  ;;  %s2197_s17 = scalar_lea.hbm %s2196_s21, 32  ;;  %s3172_s29 = int_to_ptr.vmem [resolvable:$true] %s1573_s29 }
 0x135   : > { %v1332_v37 = vmul.f32 %v1292_v1, %v1264_v28  ;;  %2109 = vpow2.f32 %v1056_v18  ;;  %v1419_v50 = vmul.f32 %v1415_v21, %v1051_v25  ;;  %v1196_v29 = vmul.f32 1.442695, %v1189_v35  ;;  %p2198_p6 = scmp.ne.s32.totalorder %s2196_s21, %s2197_s17  ;;  %p2202_p10 = scmp.lt.s32.totalorder %s2196_s21, %s3306_s9 }
 0x136   : > { %v1304_v56 = vmul.f32 %v1300_v53, %v1096_v46  ;;  %v1324_v31 = vmul.f32 %v1320_v62, %v1184_v27  ;;  %v1447_v33 = vmul.f32 %v1443_v36, %v3001_v60  ;;  %v1479_v41 = vmul.f32 %v1475_v3, %v1227_v7  ;;  %p2203_p11 = scmp.lt.s32.totalorder %s2201_s20, %s2197_s17 }
 0x137   : > { %v3062_v57 = vmul.f32 %v2102_v47, %v2876_v4  ;;  %v3065_v61 = vmul.f32 %v2104_v52, %v2988_v43  ;;  %v3067_v44 = vmul.f32 0.6931472, %v2106_v17  ;;  %v1377_v19 = vadd.f32 %v1361_v13, %v2917_v38  ;;  %p2199_p7 = pnand %p2198_p6, %p2398_p4 }
 0x138   : > { %2111 = vrcp.f32 %v2822_v42  ;;  %v1268_v26 = vsub.f32 0.0, %v1255_v9  ;;  %v1308_v5 = vadd.f32 %v1304_v56, %v1296_v40  ;;  %v1451_v46 = vadd.f32 %v1447_v33, %v1419_v50  ;;  %p2204_p12 = por %p2203_p11, %p2202_p10 }
 0x139   : > { %v3075_v4 = vpop.eup %2107  ;;  %v1173_v43 = vsub.f32 %v2932_v58, %v3067_v44  ;;  %2113 = vpow2.f32 %v1196_v29  ;;  %v3081_v60 = vadd.f32 %v3065_v61, %v3062_v57  ;;  %v1340_v9 = vsub.f32 2.0, %v1292_v1  ;;  %p2200_p9 = pneg %p2199_p7 }
 0x13a   : > { %2115 = vlog2.f32 %v3011_v22  ;;  %v1316_v7 = vadd.f32 %v1312_v24, %v1308_v5  ;;  %v3084_v32 = vadd.f32 %v1479_v41, %v1451_v46  ;;  %v1381_v27 = vadd.f32 %v1377_v19, %v3008_v0 }
 0x13b   : > { %v3090_v14 = vpop.eup %2109  ;;  %2117 = vlog2.f32 %v3047_v20  ;;  %v1385_v48 = vadd.f32 %v2924_v12, %v2705_v63  ;;  %v1461_v6 = vmul.f32 3.0, %v3008_v0  ;;  %v1272_v2 = vmax.f32 %v1268_v26, -100.0  ;;  %p2205_p13 = pnand %p2204_p12, %p2200_p9 }
 0x13c   : > { %v1328_v18 = vadd.f32 %v1324_v31, %v1316_v7  ;;  %v1880_v21 = vadd.f32 -3.0, %v2981_v30  ;;  %v1401_v35 = vmul.f32 3.0, %v2917_v38  ;;  %v3107_v47 = vadd.f32 1.0, %v3075_v4  ;;  %v3333_v38 = vld [vmem:[#allocation15_spill] sm:$0xff] }
 0x13d   : > { %v1389_v0 = vadd.f32 %v2798_v11, %v1385_v48  ;;  %v1429_v39 = vmul.f32 3.0, %v1361_v13  ;;  %v3111_v1 = vadd.f32 %v1461_v6, %v1381_v27  ;;  %v1344_v30 = vmul.f32 %v1340_v9, %v1272_v2 }
 0x13e   : > { %v3113_v25 = vpop.eup %2111  ;;  %v1336_v52 = vadd.f32 %v1332_v37, %v1328_v18  ;;  %2119 = vlog2.f32 %v2965_v16  ;;  %v3118_v28 = vadd.f32 %v2718_v8, %v3333_v38  ;;  %v3124_v3 = vadd.f32 1.0, %v3090_v14 }
 0x13f   : > { %v2114_v36 = vpop.eup %2113  ;;  %v1393_v13 = vmul.f32 2.0, %v1389_v0  ;;  %v3126_v17 = vadd.f32 %v1401_v35, %v1381_v27  ;;  %v3128_v40 = vadd.f32 %v1429_v39, %v1381_v27  ;;  %v3135_v53 = vmul.f32 0.00012207031, %v1880_v21 }
 0x140   : > { %v3133_v16 = vpop.eup %2115  ;;  %v1348_v8 = vadd.f32 %v1344_v30, %v1336_v52  ;;  %v1205_v24 = vmul.f32 %v2114_v36, %v1201_v59  ;;  %v1217_v62 = vmul.f32 %v2114_v36, %v2114_v36  ;;  %1123 = vst [vmem:[%s2794_s30 + $0x8] sm:$0xff] %v3118_v28  ;;  %2121 = vlog2.f32 %v3107_v47 }
 0x141   : > { %v3139_v37 = vpop.eup %2117  ;;  %v1409_v50 = vmul.f32 %v2705_v63, %v1393_v13  ;;  %v1437_v29 = vmul.f32 %v2924_v12, %v1393_v13  ;;  %v1142_v56 = vmul.f32 1.442695, %v2922_v54 }
 0x142   : > { %2208 = shalt.err (!%p2205_p13)
}
 0x143   : > { %1909 = dma.vmem_to_hbm [thread:$0]  (%p2398_p4), %s3120_s24, 512, %s1558_s25, %s1512_s16, %s2294_s28, %s2294_s28, %s2295_s0   ;;  %v1352_v63 = vsub.f32 0.0, %v1348_v8  ;;  %v3167_v12 = vadd.f32 %v2798_v11, %v1205_v24  ;;  %v1221_v31 = vmul.f32 %v1217_v62, %v1217_v62  ;;  %v1469_v33 = vmul.f32 %v2798_v11, %v1393_v13  ;;  %v3334_v7 = vld [vmem:[#allocation18_spill] sm:$0xff] }
 0x144   : > { %2123 = vlog2.f32 %v3124_v3  ;;  %v1413_v41 = vsub.f32 %v3126_v17, %v1409_v50  ;;  %v1441_v19 = vsub.f32 %v3128_v40, %v1437_v29  ;;  %v1144_v26 = vmul.f32 1.442695, %v3118_v28  ;;  %v2120_v5 = vpop.eup %2119  ;;  %s2223_s24 = sshra.s32 %s1576_s14, 4  ;;  %s2224_s24 = int_to_ptr.hbm [resolvable:$true] %s2223_s24 }
 0x145   : > { %v3179_v46 = vmul.f32 9.536743e-07, %v1352_v63  ;;  %1213 = vst [vmem:[%s2810_s13 + $0x18] sm:$0xff] %v3167_v12  ;;  %2125 = vrcp.f32 %v1221_v31  ;;  %v1236_v11 = vmul.f32 1.442695, %v3167_v12  ;;  %v1373_v9 = vadd.f32 %v3334_v7, %v1221_v31  ;;  %s2225_s25 = scalar_lea.hbm %s2224_s24, 32  ;;  %s2229_s13 = scalar_lea.hbm %s3307_s10, 64 }
 0x146   : > { %v1473_v27 = vsub.f32 %v3111_v1, %v1469_v33  ;;  %2127 = vpow2.f32 %v1142_v56  ;;  %p2226_p0 = scmp.ne.s32.totalorder %s2224_s24, %s2225_s25  ;;  %p2230_p3 = scmp.lt.s32.totalorder %s2224_s24, %s3307_s10 }
 0x147   : > { %p2231_p5 = scmp.lt.s32.totalorder %s2229_s13, %s2225_s25 }
 0x148   : > { %p2227_p1 = pnand %p2226_p0, %p2398_p4 }
 0x149   : > { %p2232_p6 = por %p2231_p5, %p2230_p3 }
 0x14a   : > { %p2228_p2 = pneg %p2227_p1 }
 0x14c   : > { %p2233_p7 = pnand %p2232_p6, %p2228_p2 }
 0x14e   : > { %2236 = shalt.err (!%p2233_p7)
}
 0x14f   : > { %1910 = dma.vmem_to_hbm [thread:$0]  (%p2398_p4), %s3172_s29, 512, %s1576_s14, %s1512_s16, %s2294_s28, %s2294_s28, %s2295_s0   ;;  %v1500_v48 = vsub.f32 %v3179_v46, %v3135_v53  ;;  %2129 = vpow2.f32 %v1236_v11  ;;  %v3335_v6 = vld [vmem:[#allocation17_spill] sm:$0xff]  ;;  %v1425_v18 = vsub.f32 %v1373_v9, %v2822_v42  ;;  %v2122_v21 = vpop.eup %2121  ;;  %v1457_v35 = vsub.f32 %v1373_v9, %v1221_v31 }
 0x150   : > { %v1397_v2 = vsub.f32 %v1373_v9, %v3335_v6  ;;  %2131 = vpow2.f32 %v1144_v26  ;;  %v1053_v59 = vmul.f32 0.5, %v2860_v49  ;;  %v1141_v0 = vmul.f32 0.5, %v3113_v25  ;;  %v2124_v52 = vpop.eup %2123  ;;  %s595_s28 = scalar_lea.vmem %s3308_s11, %s2429_s12 }
 0x151   : > { %v1445_v1 = vadd.f32 %v1441_v19, %v1425_v18  ;;  %v1477_v30 = vadd.f32 %v1473_v27, %v1457_v35  ;;  %v2126_v38 = vpop.eup %2125  ;;  %2133 = vrcp.f32 %v3047_v20  ;;  %v1251_v40 = vmul.f32 0.6931472, %v3133_v16  ;;  %v3336_v19 = vld [vmem:[#allocation16_spill] sm:$0xff] }
 0x152   : > { %v1417_v39 = vadd.f32 %v1413_v41, %v1397_v2  ;;  %v2128_v17 = vpop.eup %2127  ;;  %v1229_v42 = vmul.f32 0.5, %v2126_v38  ;;  %v1075_v24 = vmul.f32 0.6931472, %v3139_v37  ;;  %2135 = vrcp.f32 %v3011_v22 }
 0x153   : > { %v1449_v13 = vmul.f32 %v1445_v1, %v1141_v0  ;;  %v1150_v25 = vadd.f32 1.0, %v2128_v17  ;;  %2137 = vrcp.f32 %v3124_v3  ;;  %v1081_v50 = vmul.f32 0.6931472, %v2120_v5 }
 0x154   : > { %v1421_v36 = vmul.f32 %v1417_v39, %v1053_v59  ;;  %v1481_v20 = vmul.f32 %v1477_v30, %v1229_v42  ;;  %v1258_v16 = vsub.f32 %v2783_v45, %v1251_v40  ;;  %v3221_v63 = vmul.f32 0.6931472, %v2122_v21 }
 0x155   : > { %v2130_v8 = vpop.eup %2129  ;;  %2139 = vrcp.f32 %v1150_v25  ;;  %v1082_v31 = vsub.f32 %v2835_v55, %v1075_v24  ;;  %v1266_v33 = vsub.f32 0.0, %v1251_v40  ;;  %v3226_v41 = vmul.f32 0.6931472, %v2124_v52 }
 0x156   : > { %v1453_v49 = vadd.f32 %v1449_v13, %v1421_v36  ;;  %v3216_v62 = vpop.eup %2131  ;;  %v1241_v29 = vadd.f32 1.0, %v2130_v8  ;;  %v1090_v3 = vsub.f32 0.0, %v1075_v24  ;;  %v1085_v26 = vsub.f32 %v3336_v19, %v1081_v50 }
 0x157   : > { %v1151_v56 = vadd.f32 1.0, %v3216_v62  ;;  %v2134_v22 = vpop.eup %2133  ;;  %v1093_v11 = vsub.f32 0.0, %v1081_v50  ;;  %v1181_v45 = vsub.f32 0.0, %v3067_v44  ;;  %v1259_v27 = vsub.f32 %v2950_v10, %v3221_v63 }
 0x158   : > { %2141 = vrcp.f32 %v1241_v29  ;;  %v3223_v37 = vadd.f32 %v1481_v20, %v1453_v49  ;;  %v2136_v5 = vpop.eup %2135  ;;  %v1070_v9 = vmul.f32 %v2134_v22, %v2943_v23  ;;  %v1086_v6 = vmax.f32 %v1082_v31, -100.0 }
 0x159   : > { %2143 = vlog2.f32 %v1241_v29  ;;  %v2138_v7 = vpop.eup %2137  ;;  %v3233_v2 = vmax.f32 %v1258_v16, -100.0  ;;  %v3235_v18 = vmax.f32 %v1266_v33, -100.0  ;;  %v1083_v21 = vsub.f32 %v2991_v15, %v3226_v41 }
 0x15a   : > { %2145 = vrcp.f32 %v1151_v56  ;;  %v3239_v59 = vmax.f32 %v1090_v3, -100.0  ;;  %v1089_v0 = vmax.f32 %v1085_v26, -100.0  ;;  %v1097_v1 = vmax.f32 %v1093_v11, -100.0 }
 0x15b   : > { %2147 = vlog2.f32 %v1150_v25  ;;  %v2140_v55 = vpop.eup %2139  ;;  %v1177_v10 = vmax.f32 %v1173_v43, -100.0  ;;  %v1185_v52 = vmax.f32 %v1181_v45, -100.0  ;;  %v3245_v36 = vmax.f32 %v1259_v27, -100.0 }
 0x15c   : > { %2149 = vlog2.f32 %v1151_v56  ;;  %v1158_v23 = vmul.f32 %v2140_v55, %v2128_v17  ;;  %v1246_v15 = vmul.f32 %v2136_v5, %v2913_v34  ;;  %v1087_v24 = vmax.f32 %v1083_v21, -100.0 }
 0x15d   : > { %2151 = vrcp.f32 %v3107_v47  ;;  %v1071_v47 = vmul.f32 %v2138_v7, %v3090_v14  ;;  %v1091_v17 = vsub.f32 0.0, %v3226_v41 }
 0x15e   : > { %v2142_v35 = vpop.eup %2141  ;;  %v1274_v40 = vadd.f32 %v1158_v23, %v1070_v9 }
 0x15f   : > { %v2144_v39 = vpop.eup %2143  ;;  %v1249_v30 = vmul.f32 %v2142_v35, %v2130_v8 }
 0x160   : > { %v2146_v38 = vpop.eup %2145  ;;  %v1257_v13 = vmul.f32 0.6931472, %v2144_v39  ;;  %v1278_v8 = vadd.f32 %v1274_v40, %v1246_v15 }
 0x161   : > { %v2148_v42 = vpop.eup %2147  ;;  %v1281_v49 = vadd.f32 %v3081_v60, %v1249_v30  ;;  %v1159_v14 = vmul.f32 %v2146_v38, %v3216_v62 }
 0x162   : > { %v2150_v25 = vpop.eup %2149  ;;  %v1261_v58 = vsub.f32 %v3167_v12, %v1257_v13  ;;  %v1269_v44 = vsub.f32 0.0, %v1257_v13  ;;  %v1163_v43 = vmul.f32 0.6931472, %v2148_v42  ;;  %v1282_v55 = vsub.f32 %v1278_v8, %v1070_v9 }
 0x163   : > { %v1285_v50 = vsub.f32 %v1281_v49, %v3062_v57  ;;  %v1289_v29 = vsub.f32 %v1281_v49, %v3065_v61  ;;  %v1293_v34 = vsub.f32 %v1281_v49, %v1249_v30  ;;  %v1165_v20 = vmul.f32 0.6931472, %v2150_v25  ;;  %v2152_v56 = vpop.eup %2151 }
 0x164   : > { %v1265_v16 = vmax.f32 %v1261_v58, -100.0  ;;  %v1170_v22 = vsub.f32 %v2922_v54, %v1163_v43  ;;  %v1178_v31 = vsub.f32 0.0, %v1163_v43  ;;  %v1273_v3 = vmax.f32 %v1269_v44, -100.0 }
 0x165   : > { %v1297_v60 = vmul.f32 %v1285_v50, %v1089_v0  ;;  %v1301_v33 = vsub.f32 2.0, %v1285_v50  ;;  %v1313_v41 = vmul.f32 %v1289_v29, %v1177_v10  ;;  %v1321_v12 = vsub.f32 2.0, %v1289_v29 }
 0x166   : > { %v1333_v19 = vmul.f32 %v1293_v34, %v1265_v16  ;;  %v1341_v26 = vsub.f32 2.0, %v1293_v34  ;;  %v1171_v57 = vsub.f32 %v3118_v28, %v1165_v20  ;;  %v1174_v11 = vmax.f32 %v1170_v22, -100.0 }
 0x167   : > { %v1305_v5 = vmul.f32 %v1301_v33, %v1097_v1  ;;  %v1325_v61 = vmul.f32 %v1321_v12, %v1185_v52  ;;  %v1247_v45 = vmul.f32 %v2152_v56, %v3075_v4  ;;  %v1179_v27 = vsub.f32 0.0, %v1165_v20 }
 0x168   : > { %v1345_v7 = vmul.f32 %v1341_v26, %v1273_v3  ;;  %v1275_v62 = vadd.f32 %v1159_v14, %v1071_v47  ;;  %v1182_v21 = vmax.f32 %v1178_v31, -100.0  ;;  %v1286_v35 = vsub.f32 %v1278_v8, %v1158_v23 }
 0x169   : > { %v1309_v54 = vadd.f32 %v1305_v5, %v1297_v60  ;;  %v1290_v0 = vsub.f32 %v1278_v8, %v1246_v15  ;;  %v1175_v39 = vmax.f32 %v1171_v57, -100.0  ;;  %v1294_v30 = vmul.f32 %v1282_v55, %v1086_v6 }
 0x16a   : > { %v1279_v10 = vadd.f32 %v1275_v62, %v1247_v45  ;;  %v1298_v38 = vsub.f32 2.0, %v1282_v55  ;;  %v1310_v40 = vmul.f32 %v1286_v35, %v1174_v11  ;;  %v1318_v28 = vsub.f32 2.0, %v1286_v35 }
 0x16b   : > { %v1317_v13 = vadd.f32 %v1313_v41, %v1309_v54  ;;  %v1330_v1 = vmul.f32 %v1290_v0, %v3233_v2  ;;  %v1095_v25 = vmax.f32 %v1091_v17, -100.0  ;;  %v1338_v44 = vsub.f32 2.0, %v1290_v0 }
 0x16c   : > { %v1283_v52 = vsub.f32 %v1279_v10, %v1071_v47  ;;  %v1287_v42 = vsub.f32 %v1279_v10, %v1159_v14  ;;  %v1291_v4 = vsub.f32 %v1279_v10, %v1247_v45  ;;  %v1302_v49 = vmul.f32 %v1298_v38, %v3239_v59 }
 0x16d   : > { %v1329_v9 = vadd.f32 %v1325_v61, %v1317_v13  ;;  %v1322_v58 = vmul.f32 %v1318_v28, %v1182_v21  ;;  %v1183_v50 = vmax.f32 %v1179_v27, -100.0  ;;  %v1342_v47 = vmul.f32 %v1338_v44, %v3235_v18 }
 0x16e   : > { %v1295_v23 = vmul.f32 %v1283_v52, %v1087_v24  ;;  %v1299_v15 = vsub.f32 2.0, %v1283_v52  ;;  %v1306_v43 = vadd.f32 %v1302_v49, %v1294_v30  ;;  %v1311_v8 = vmul.f32 %v1287_v42, %v1175_v39 }
 0x16f   : > { %v1337_v6 = vadd.f32 %v1333_v19, %v1329_v9  ;;  %v1319_v29 = vsub.f32 2.0, %v1287_v42  ;;  %v1331_v34 = vmul.f32 %v1291_v4, %v3245_v36  ;;  %v1881_v59 = vadd.f32 -3.0, %v3223_v37 }
 0x170   : > { %v1303_v20 = vmul.f32 %v1299_v15, %v1095_v25  ;;  %v1314_v2 = vadd.f32 %v1310_v40, %v1306_v43  ;;  %v1267_v16 = vsub.f32 0.0, %v3221_v63  ;;  %v1339_v33 = vsub.f32 2.0, %v1291_v4 }
 0x171   : > { %v1349_v56 = vadd.f32 %v1345_v7, %v1337_v6  ;;  %v1323_v17 = vmul.f32 %v1319_v29, %v1183_v50  ;;  %v1497_v12 = vmul.f32 0.00012207031, %v1881_v59  ;;  %v1878_v36 = vadd.f32 -3.0, %v2892_v51 }
 0x172   : > { %v1307_v14 = vadd.f32 %v1303_v20, %v1295_v23  ;;  %v1326_v24 = vadd.f32 %v1322_v58, %v1314_v2  ;;  %v1271_v3 = vmax.f32 %v1267_v16, -100.0  ;;  %v1879_v63 = vadd.f32 -3.0, %v3084_v32 }
 0x173   : > { %v1353_v22 = vsub.f32 0.0, %v1349_v56  ;;  %v1494_v61 = vmul.f32 0.00012207031, %v1878_v36 }
 0x174   : > { %v1315_v31 = vadd.f32 %v1311_v8, %v1307_v14  ;;  %v1334_v60 = vadd.f32 %v1330_v1, %v1326_v24  ;;  %v1343_v37 = vmul.f32 %v1339_v33, %v1271_v3  ;;  %v1495_v62 = vmul.f32 0.00012207031, %v1879_v63 }
 0x175   : > { %v1493_v41 = vmul.f32 9.536743e-07, %v1353_v22 }
 0x176   : > { %v1327_v19 = vadd.f32 %v1323_v17, %v1315_v31  ;;  %v1346_v26 = vadd.f32 %v1342_v47, %v1334_v60 }
 0x177   : > { %v1501_v18 = vsub.f32 %v1493_v41, %v1497_v12 }
 0x178   : > { %v1335_v57 = vadd.f32 %v1331_v34, %v1327_v19  ;;  %v1350_v5 = vsub.f32 0.0, %v1346_v26 }
 0x17a   : > { %v1347_v11 = vadd.f32 %v1343_v37, %v1335_v57  ;;  %v1490_v45 = vmul.f32 9.536743e-07, %v1350_v5 }
 0x17c   : > { %v1351_v7 = vsub.f32 0.0, %v1347_v11  ;;  %v1498_v27 = vsub.f32 %v1490_v45, %v1494_v61 }
 0x17e   : > { %v1491_v55 = vmul.f32 9.536743e-07, %v1351_v7 }
 0x180   : > { %v1499_v54 = vsub.f32 %v1491_v55, %v1495_v62 }
 0x182   : > { %v1502_v21 = vadd.f32 %v1499_v54, %v1498_v27 }
 0x184   : > { %v1503_v51 = vadd.f32 %v1502_v21, %v1500_v48 }
 0x186   : > { %v1504_v35 = vadd.f32 %v1503_v51, %v1501_v18 }
 0x188   : > { %1505 = vst [vmem:[%s595_s28] sm:$0xff] %v1504_v35 }
 0x189 PF: > { %s3337_s23 = sld [smem:[#allocation9_spill]]  ;;  %p1924_p4 = scmp.ge.s32.totalorder %s2291_s22, 2 }
 0x18b   : > { %p1915_p9 = pnand %p1924_p4, %p2407_p8 }
 0x18d   : > { %p1916_p10 = pneg %p1915_p9 }
 0x18f   : > { %s1593_s14 = sand.u32 1, %s3337_s23  }
 0x190   : > { %s1594_s16 = scalar_lea.sflag [#allocation3], %s1593_s14 }
 0x191   : > { %2262 = dma.done.wait (%p1916_p10), %s1594_s16, 512  }
 0x192   : > { %2264 = vsyncadd (%p1916_p10), %s1594_s16, 4294966784  ;;  %s3339_s20 = sadd.s32 4294967294, %s2291_s22  }
 0x193   : > { %s1603_s15 = sand.u32 1, %s3339_s20  }
 0x194   : > { %s1604_s26 = scalar_lea.sflag [#allocation5], %s1603_s15 }
 0x195   : > { %2266 = dma.done.wait (%p1916_p10), %s1604_s26, 1024  }
 0x196   : > { %2268 = vsyncadd (%p1916_p10), %s1604_s26, 4294966272  ;;  %s28_s22 = sadd.s32 1, %s2291_s22   ;;  %s3340_s12 = sld [smem:[#allocation10_spill]] }
 0x197   : > { %p25_p11 = scmp.ge.s32.totalorder %s28_s22, 4   ;;  %s3341_s19 = sld [smem:[#allocation14_spill]] }
 0x198   : > { %s3342_s20 = sld [smem:[#allocation11_spill]]  ;;  %s3344_s17 = smov %s2275_s18 }
 0x199   : > { %s3343_s21 = sld [smem:[#allocation12_spill]]  ;;  %27 = sbr.rel (!%p25_p11) target bundleno = 8 (0x8), region = 146 }
 0x19c   : > { %s3345_s18 = smov %s3340_s12 }
 0x19e   :  { %1630 = vsyncpa [#allocation3], 1 }
 0x19f   :  { %1632 = vsyncpa [#allocation3 + $0x1], 1 }
 0x1a0   :  { %1633 = vsyncpa [#allocation5], 1 }
 0x1a1   :  { %1635 = vsyncpa [#allocation5 + $0x1], 1 }

</bundles_post_ra>
